<compile_context>
chip_gen: v5e
topology: v5e:2x2
jax: 0.10.0
libtpu: 0.0.40
codegen_flags: <defaults>
</compile_context>

<pallas_src>
import math
import functools

import jax
import jax.numpy as jnp
from jax.experimental import pallas as pl
from jax.experimental.pallas import tpu as pltpu


_NEG_FILL = -1e30  # finite "masked" fill (avoids inf - inf = NaN for edge-poor rows)


def _spatial_attention_kernel(num_heads, ln_eps,
                              x_ref, mask_ref,
                              wqkv_ref, bqkv_ref,
                              wo_ref, bo_ref,
                              gamma_ref, beta_ref,
                              out_ref):
    """One block of Bb batch elements per grid step.

    x_ref    : (Bb, N, H)   node features
    mask_ref : (N, N)       1.0 where a directed edge src->dst exists
    wqkv_ref : (H, 3H)      [Wq | Wk | Wv] 128-lane-aligned column slabs
    bqkv_ref : (1, 3H)
    wo_ref   : (H, H)       output projection (input rows are head-major)
    bo_ref / gamma_ref / beta_ref : (1, H)
    """
    x = x_ref[...]                                   # (Bb, N, H) f32
    bb, n, hdim = x.shape
    d = hdim // num_heads
    scale = 1.0 / math.sqrt(d)

    # Additive mask built in-kernel (VPU select with plenty of slack).
    bias = jnp.where(mask_ref[...] > 0.0,
                     jnp.float32(0.0), jnp.float32(_NEG_FILL))          # (N, N)

    # ---- fused Q/K/V: ONE (Bb*N, H) x (H, 3H) MXU matmul, K=128 ----
    xf = x.reshape(bb * n, hdim)                                        # (M, H)
    qkv = jnp.dot(xf, wqkv_ref[...],
                  preferred_element_type=jnp.float32) + bqkv_ref[...]   # (M, 3H)
    q_slab = qkv[:, :hdim]              # 128-lane-aligned slab slices: free
    k_slab = qkv[:, hdim:2 * hdim]
    v_slab = qkv[:, 2 * hdim:]

    # ---- head split: (Bb*N, H) -> (heads*Bb, N, d) via lane slices + concat ----
    # (the unavoidable per-head relayout; rides in VPU/XLU slack)
    def split_heads(slab):
        s3 = slab.reshape(bb, n, hdim)
        return jnp.concatenate(
            [s3[:, :, h * d:(h + 1) * d] for h in range(num_heads)], axis=0)

    q = split_heads(q_slab)                                             # (h*Bb, N, d)
    k = split_heads(k_slab)
    v = split_heads(v_slab)

    # ---- batched (heads*Bb, N, N) masked attention; softmax math in f32 ----
    scores = jnp.einsum('gnd,gmd->gnm',
                        q.astype(jnp.bfloat16), k.astype(jnp.bfloat16),
                        preferred_element_type=jnp.float32) * scale
    scores = scores + bias[None, :, :]                                  # broadcast mask
    m = jnp.max(scores, axis=-1, keepdims=True)
    e = jnp.exp(scores - m)
    attn = e * pl.reciprocal(jnp.sum(e, axis=-1, keepdims=True), approx=True)
    # NOTE: nn.Dropout(0.1) is identity in eval/inference mode.
    att = jnp.einsum('gnm,gmd->gnd',
                     attn.astype(jnp.bfloat16), v.astype(jnp.bfloat16),
                     preferred_element_type=jnp.float32)                # (h*Bb, N, d)

    # ---- merge heads -> (Bb*N, H) head-major, then ONE K=128 output matmul ----
    a4 = att.reshape(num_heads, bb, n, d)
    att_flat = jnp.concatenate([a4[h] for h in range(num_heads)],
                               axis=-1).reshape(bb * n, hdim)           # (M, H)
    proj = jnp.dot(att_flat, wo_ref[...],
                   preferred_element_type=jnp.float32) + bo_ref[...]    # (M, H)

    # ---- residual + LayerNorm over the hidden dim ----
    y = xf + proj
    mean = jnp.mean(y, axis=-1, keepdims=True)
    var = jnp.mean(jnp.square(y - mean), axis=-1, keepdims=True)
    out = (y - mean) * jax.lax.rsqrt(var + ln_eps)
    out = out * gamma_ref[...] + beta_ref[...]

    out_ref[...] = out.reshape(bb, n, hdim).astype(out_ref.dtype)       # lane-dense store


def _num_tensorcores_per_chip():
    """Best-effort: 2 only for chips known to have 2 TensorCores (v7x); else 1."""
    try:
        kind = jax.devices()[0].device_kind.lower()
    except Exception:
        return 1
    return 2 if ("v7" in kind or "7x" in kind) else 1


def spatial_attention_pallas(x, edge_mask, params, num_heads=4, ln_eps=1e-5,
                             block_batch=None):
    """x: (B, N, H) f32; edge_mask: (N, N) f32 (1.0 = directed edge src->dst)."""
    b, n, h = x.shape
    assert h % num_heads == 0

    # Batch-block size: amortize per-grid-step overhead (~0.35us) on single-TC
    # chips (one big block), keep >=2 grid steps on 2-TC chips (v7x megacore).
    if block_batch is None:
        n_tc = _num_tensorcores_per_chip()
        if n_tc > 1 and b >= n_tc:
            block_batch = max(1, min(8, (b + n_tc - 1) // n_tc))
        else:
            block_batch = min(8, b)
    block_batch = max(1, min(block_batch, b))

    num_blocks = (b + block_batch - 1) // block_batch
    bp = num_blocks * block_batch
    x_in = x if bp == b else jnp.pad(x, ((0, bp - b), (0, 0), (0, 0)))

    # Raw 0/1 mask; the additive -1e30 bias is formed in-kernel.  (For large N
    # pass this as int8 to cut DMA bytes 4x; irrelevant at N=16.)
    mask = (edge_mask > 0.0).astype(jnp.float32)                         # (N, N)

    # Fused Q|K|V weights as 128-lane-aligned column slabs (layout plumbing).
    wqkv = jnp.concatenate([params["wq"], params["wk"], params["wv"]], axis=1)  # (H, 3H)
    bqkv = jnp.concatenate([params["bq"], params["bk"], params["bv"]], axis=1)  # (1, 3H)

    kernel = functools.partial(_spatial_attention_kernel, num_heads, ln_eps)
    out = pl.pallas_call(
        kernel,
        out_shape=jax.ShapeDtypeStruct((bp, n, h), x.dtype),
        grid=(num_blocks,),
        in_specs=[
            pl.BlockSpec((block_batch, n, h), lambda i: (i, 0, 0)),     # x
            pl.BlockSpec((n, n), lambda i: (0, 0)),                     # edge mask (0/1)
            pl.BlockSpec((h, 3 * h), lambda i: (0, 0)),                 # fused Wqkv
            pl.BlockSpec((1, 3 * h), lambda i: (0, 0)),                 # fused bqkv
            pl.BlockSpec((h, h), lambda i: (0, 0)),                     # Wout
            pl.BlockSpec((1, h), lambda i: (0, 0)),                     # bout
            pl.BlockSpec((1, h), lambda i: (0, 0)),                     # ln gamma
            pl.BlockSpec((1, h), lambda i: (0, 0)),                     # ln beta
        ],
        out_specs=pl.BlockSpec((block_batch, n, h), lambda i: (i, 0, 0)),
        compiler_params=pltpu.CompilerParams(dimension_semantics=("parallel",)),
    )(x_in, mask, wqkv, bqkv, params["wo"], params["bo"],
      params["gamma"], params["beta"])
    return out[:b]


def spatial_attention_ref(x, edge_mask, params, num_heads=4, ln_eps=1e-5):
    """Pure-JAX reference mirroring the PyTorch SpatialAttention forward (eval mode)."""
    b, n, h = x.shape
    d = h // num_heads

    def lin(z, w, bias):
        return jnp.einsum('bnh,hk->bnk', z, w) + bias[0]

    q = lin(x, params["wq"], params["bq"]).reshape(b, n, num_heads, d).transpose(0, 2, 1, 3)
    k = lin(x, params["wk"], params["bk"]).reshape(b, n, num_heads, d).transpose(0, 2, 1, 3)
    v = lin(x, params["wv"], params["bv"]).reshape(b, n, num_heads, d).transpose(0, 2, 1, 3)

    scores = jnp.einsum('bhnd,bhmd->bhnm', q, k) / math.sqrt(d)
    mask = (edge_mask > 0.0)[None, None]
    scores = jnp.where(mask, scores, -jnp.inf)
    attn = jax.nn.softmax(scores, axis=-1)
    attended = jnp.einsum('bhnm,bhmd->bhnd', attn, v)
    attended = attended.transpose(0, 2, 1, 3).reshape(b, n, h)
    out = lin(attended, params["wo"], params["bo"])
    y = x + out
    mean = jnp.mean(y, axis=-1, keepdims=True)
    var = jnp.mean((y - mean) ** 2, axis=-1, keepdims=True)
    return (y - mean) / jnp.sqrt(var + ln_eps) * params["gamma"][0] + params["beta"][0]


def init_params(key, hidden_dim):
    """Deterministic parameter init (Linear weights stored as (in, out))."""
    ks = jax.random.split(key, 8)
    bound = 1.0 / math.sqrt(hidden_dim)
    u = lambda kk, shape: jax.random.uniform(kk, shape, jnp.float32, -bound, bound)
    return {
        "wq": u(ks[0], (hidden_dim, hidden_dim)), "bq": u(ks[1], (1, hidden_dim)),
        "wk": u(ks[2], (hidden_dim, hidden_dim)), "bk": u(ks[3], (1, hidden_dim)),
        "wv": u(ks[4], (hidden_dim, hidden_dim)), "bv": u(ks[5], (1, hidden_dim)),
        "wo": u(ks[6], (hidden_dim, hidden_dim)), "bo": u(ks[7], (1, hidden_dim)),
        "gamma": jnp.ones((1, hidden_dim), jnp.float32),
        "beta": jnp.zeros((1, hidden_dim), jnp.float32),
    }


if __name__ == "__main__":
    # Shapes implied by the module config: hidden_dim=128, num_attention_heads=4.
    BATCH = 2
    NUM_NODES = 16
    HIDDEN = 128
    NUM_HEADS = 4

    key = jax.random.PRNGKey(0)
    k_x, k_p, k_e = jax.random.split(key, 3)

    x = jax.random.normal(k_x, (BATCH, NUM_NODES, HIDDEN), jnp.float32)
    params = init_params(k_p, HIDDEN)

    # Deterministic edge_index: self-loops + random directed edges, densified to
    # an (N, N) mask exactly as the PyTorch forward does.
    n_rand_edges = 64
    src_extra = jax.random.randint(k_e, (n_rand_edges,), 0, NUM_NODES)
    dst_extra = jax.random.randint(jax.random.fold_in(k_e, 1), (n_rand_edges,), 0, NUM_NODES)
    src = jnp.concatenate([jnp.arange(NUM_NODES), src_extra])
    dst = jnp.concatenate([jnp.arange(NUM_NODES), dst_extra])
    edge_mask = jnp.zeros((NUM_NODES, NUM_NODES), jnp.float32).at[src, dst].set(1.0)

    out = spatial_attention_pallas(x, edge_mask, params, num_heads=NUM_HEADS)
    out = jax.block_until_ready(out)

    ref = spatial_attention_ref(x, edge_mask, params, num_heads=NUM_HEADS)
    assert out.shape == (BATCH, NUM_NODES, HIDDEN)
    assert bool(jnp.all(jnp.isfinite(out)))
    # Tolerance covers TPU default-precision MXU passes, the explicit bf16
    # operand casts in the kernel, and the approximate-reciprocal softmax.
    assert bool(jnp.max(jnp.abs(out - ref)) < 3e-2), "mismatch vs JAX reference"

    print("KERNEL_OK")
</pallas_src>

<mosaic_0001>
module attributes {stable_mosaic.version = 11 : i64} {
  func.func @_spatial_attention_kernel(%arg0: i32, %arg1: memref<2x16x128xf32, #tpu.memory_space<vmem>>, %arg2: memref<16x16xf32, #tpu.memory_space<vmem>>, %arg3: memref<128x384xf32, #tpu.memory_space<vmem>>, %arg4: memref<1x384xf32, #tpu.memory_space<vmem>>, %arg5: memref<128x128xf32, #tpu.memory_space<vmem>>, %arg6: memref<1x128xf32, #tpu.memory_space<vmem>>, %arg7: memref<1x128xf32, #tpu.memory_space<vmem>>, %arg8: memref<1x128xf32, #tpu.memory_space<vmem>>, %arg9: memref<2x16x128xf32, #tpu.memory_space<vmem>>) attributes {dimension_semantics = [#tpu.dimension_semantics<parallel>], iteration_bounds = array<i64: 1>, scalar_prefetch = 0 : i64, scratch_operands = 0 : i64, tpu.core_type = #tpu.core_type<tc>, window_params = [{transform_indices = @transform_0, window_bounds = array<i64: 2, 16, 128>}, {pipeline_mode = #tpu.pipeline_mode<synchronous>, transform_indices = @transform_1, window_bounds = array<i64: 16, 16>}, {pipeline_mode = #tpu.pipeline_mode<synchronous>, transform_indices = @transform_2, window_bounds = array<i64: 128, 384>}, {pipeline_mode = #tpu.pipeline_mode<synchronous>, transform_indices = @transform_3, window_bounds = array<i64: 1, 384>}, {pipeline_mode = #tpu.pipeline_mode<synchronous>, transform_indices = @transform_4, window_bounds = array<i64: 128, 128>}, {pipeline_mode = #tpu.pipeline_mode<synchronous>, transform_indices = @transform_5, window_bounds = array<i64: 1, 128>}, {pipeline_mode = #tpu.pipeline_mode<synchronous>, transform_indices = @transform_6, window_bounds = array<i64: 1, 128>}, {pipeline_mode = #tpu.pipeline_mode<synchronous>, transform_indices = @transform_7, window_bounds = array<i64: 1, 128>}, {transform_indices = @transform_8, window_bounds = array<i64: 2, 16, 128>}]} {
    %c0 = arith.constant 0 : index
    %c0_0 = arith.constant 0 : index
    %c0_1 = arith.constant 0 : index
    %0 = vector.load %arg1[%c0, %c0_0, %c0_1] : memref<2x16x128xf32, #tpu.memory_space<vmem>>, vector<2x16x128xf32>
    %c0_2 = arith.constant 0 : index
    %c0_3 = arith.constant 0 : index
    %1 = vector.load %arg2[%c0_2, %c0_3] : memref<16x16xf32, #tpu.memory_space<vmem>>, vector<16x16xf32>
    %cst = arith.constant 0.000000e+00 : f32
    %2 = vector.broadcast %cst : f32 to vector<16x16xf32>
    %3 = arith.cmpf ogt, %1, %2 : vector<16x16xf32>
    %cst_4 = arith.constant 0.000000e+00 : f32
    %cst_5 = arith.constant -1.000000e+30 : f32
    %4 = vector.broadcast %cst_4 : f32 to vector<16x16xf32>
    %5 = vector.broadcast %cst_5 : f32 to vector<16x16xf32>
    %6 = arith.select %3, %4, %5 : vector<16x16xi1>, vector<16x16xf32>
    %7 = vector.shape_cast %0 : vector<2x16x128xf32> to vector<32x128xf32>
    %c0_6 = arith.constant 0 : index
    %c0_7 = arith.constant 0 : index
    %8 = vector.load %arg3[%c0_6, %c0_7] : memref<128x384xf32, #tpu.memory_space<vmem>>, vector<128x384xf32>
    %cst_8 = arith.constant dense<0.000000e+00> : vector<32x384xf32>
    %9 = tpu.matmul %7, %8, %cst_8 {dimension_numbers = #tpu.dot_dimension_numbers<[1], [0], [0], [1], [0, 0, 1, 1], [], []>} : vector<32x128xf32>, vector<128x384xf32>, vector<32x384xf32> -> vector<32x384xf32>
    %c0_9 = arith.constant 0 : index
    %c0_10 = arith.constant 0 : index
    %10 = vector.load %arg4[%c0_9, %c0_10] : memref<1x384xf32, #tpu.memory_space<vmem>>, vector<1x384xf32>
    %11 = vector.broadcast %10 : vector<1x384xf32> to vector<32x384xf32>
    %12 = arith.addf %9, %11 : vector<32x384xf32>
    %13 = vector.extract_strided_slice %12 {offsets = [0, 0], sizes = [32, 128], strides = [1, 1]} : vector<32x384xf32> to vector<32x128xf32>
    %14 = vector.extract_strided_slice %12 {offsets = [0, 128], sizes = [32, 128], strides = [1, 1]} : vector<32x384xf32> to vector<32x128xf32>
    %15 = vector.extract_strided_slice %12 {offsets = [0, 256], sizes = [32, 128], strides = [1, 1]} : vector<32x384xf32> to vector<32x128xf32>
    %16 = vector.shape_cast %13 : vector<32x128xf32> to vector<2x16x128xf32>
    %17 = vector.extract_strided_slice %16 {offsets = [0, 0, 0], sizes = [2, 16, 32], strides = [1, 1, 1]} : vector<2x16x128xf32> to vector<2x16x32xf32>
    %18 = vector.extract_strided_slice %16 {offsets = [0, 0, 32], sizes = [2, 16, 32], strides = [1, 1, 1]} : vector<2x16x128xf32> to vector<2x16x32xf32>
    %19 = vector.extract_strided_slice %16 {offsets = [0, 0, 64], sizes = [2, 16, 32], strides = [1, 1, 1]} : vector<2x16x128xf32> to vector<2x16x32xf32>
    %20 = vector.extract_strided_slice %16 {offsets = [0, 0, 96], sizes = [2, 16, 32], strides = [1, 1, 1]} : vector<2x16x128xf32> to vector<2x16x32xf32>
    %21 = tpu.concatenate %17, %18, %19, %20 in 0 : vector<2x16x32xf32>, vector<2x16x32xf32>, vector<2x16x32xf32>, vector<2x16x32xf32> -> vector<8x16x32xf32>
    %22 = vector.shape_cast %14 : vector<32x128xf32> to vector<2x16x128xf32>
    %23 = vector.extract_strided_slice %22 {offsets = [0, 0, 0], sizes = [2, 16, 32], strides = [1, 1, 1]} : vector<2x16x128xf32> to vector<2x16x32xf32>
    %24 = vector.extract_strided_slice %22 {offsets = [0, 0, 32], sizes = [2, 16, 32], strides = [1, 1, 1]} : vector<2x16x128xf32> to vector<2x16x32xf32>
    %25 = vector.extract_strided_slice %22 {offsets = [0, 0, 64], sizes = [2, 16, 32], strides = [1, 1, 1]} : vector<2x16x128xf32> to vector<2x16x32xf32>
    %26 = vector.extract_strided_slice %22 {offsets = [0, 0, 96], sizes = [2, 16, 32], strides = [1, 1, 1]} : vector<2x16x128xf32> to vector<2x16x32xf32>
    %27 = tpu.concatenate %23, %24, %25, %26 in 0 : vector<2x16x32xf32>, vector<2x16x32xf32>, vector<2x16x32xf32>, vector<2x16x32xf32> -> vector<8x16x32xf32>
    %28 = vector.shape_cast %15 : vector<32x128xf32> to vector<2x16x128xf32>
    %29 = vector.extract_strided_slice %28 {offsets = [0, 0, 0], sizes = [2, 16, 32], strides = [1, 1, 1]} : vector<2x16x128xf32> to vector<2x16x32xf32>
    %30 = vector.extract_strided_slice %28 {offsets = [0, 0, 32], sizes = [2, 16, 32], strides = [1, 1, 1]} : vector<2x16x128xf32> to vector<2x16x32xf32>
    %31 = vector.extract_strided_slice %28 {offsets = [0, 0, 64], sizes = [2, 16, 32], strides = [1, 1, 1]} : vector<2x16x128xf32> to vector<2x16x32xf32>
    %32 = vector.extract_strided_slice %28 {offsets = [0, 0, 96], sizes = [2, 16, 32], strides = [1, 1, 1]} : vector<2x16x128xf32> to vector<2x16x32xf32>
    %33 = tpu.concatenate %29, %30, %31, %32 in 0 : vector<2x16x32xf32>, vector<2x16x32xf32>, vector<2x16x32xf32>, vector<2x16x32xf32> -> vector<8x16x32xf32>
    %34 = arith.truncf %21 : vector<8x16x32xf32> to vector<8x16x32xbf16>
    %35 = arith.truncf %27 : vector<8x16x32xf32> to vector<8x16x32xbf16>
    "tpu.trace_start"() <{level = 10 : i32, message = "gnd,gmd->gnm"}> : () -> ()
    %cst_11 = arith.constant dense<0.000000e+00> : vector<8x16x16xf32>
    %36 = tpu.matmul %34, %35, %cst_11 {dimension_numbers = #tpu.dot_dimension_numbers<[2], [2], [1], [1], [0, 0, 0, 1, 1, 1], [0], [0]>} : vector<8x16x32xbf16>, vector<8x16x32xbf16>, vector<8x16x16xf32> -> vector<8x16x16xf32>
    "tpu.trace_stop"() : () -> ()
    %cst_12 = arith.constant 0.176776692 : f32
    %37 = vector.broadcast %cst_12 : f32 to vector<8x16x16xf32>
    %38 = arith.mulf %36, %37 : vector<8x16x16xf32>
    %39 = vector.shape_cast %6 : vector<16x16xf32> to vector<1x16x16xf32>
    %40 = vector.broadcast %39 : vector<1x16x16xf32> to vector<8x16x16xf32>
    %41 = arith.addf %38, %40 : vector<8x16x16xf32>
    %cst_13 = arith.constant dense<0xFF800000> : vector<8x16xf32>
    %42 = vector.multi_reduction <maximumf>, %41, %cst_13 [2] : vector<8x16x16xf32> to vector<8x16xf32>
    %43 = vector.shape_cast %42 : vector<8x16xf32> to vector<8x16x1xf32>
    %44 = vector.broadcast %43 : vector<8x16x1xf32> to vector<8x16x16xf32>
    %45 = arith.subf %41, %44 : vector<8x16x16xf32>
    %46 = math.exp %45 : vector<8x16x16xf32>
    %cst_14 = arith.constant dense<0.000000e+00> : vector<8x16xf32>
    %47 = vector.multi_reduction <add>, %46, %cst_14 [2] : vector<8x16x16xf32> to vector<8x16xf32>
    %48 = vector.shape_cast %47 : vector<8x16xf32> to vector<8x16x1xf32>
    %49 = tpu.reciprocal %48 {approx = true} : vector<8x16x1xf32> -> vector<8x16x1xf32>
    %50 = vector.broadcast %49 : vector<8x16x1xf32> to vector<8x16x16xf32>
    %51 = arith.mulf %46, %50 : vector<8x16x16xf32>
    %52 = arith.truncf %51 : vector<8x16x16xf32> to vector<8x16x16xbf16>
    %53 = arith.truncf %33 : vector<8x16x32xf32> to vector<8x16x32xbf16>
    "tpu.trace_start"() <{level = 10 : i32, message = "gnm,gmd->gnd"}> : () -> ()
    %cst_15 = arith.constant dense<0.000000e+00> : vector<8x16x32xf32>
    %54 = tpu.matmul %52, %53, %cst_15 {dimension_numbers = #tpu.dot_dimension_numbers<[2], [1], [1], [2], [0, 0, 0, 1, 1, 2], [0], [0]>} : vector<8x16x16xbf16>, vector<8x16x32xbf16>, vector<8x16x32xf32> -> vector<8x16x32xf32>
    "tpu.trace_stop"() : () -> ()
    %55 = vector.shape_cast %54 : vector<8x16x32xf32> to vector<4x2x16x32xf32>
    %56 = vector.extract_strided_slice %55 {offsets = [0, 0, 0, 0], sizes = [1, 2, 16, 32], strides = [1, 1, 1, 1]} : vector<4x2x16x32xf32> to vector<1x2x16x32xf32>
    %57 = vector.shape_cast %56 : vector<1x2x16x32xf32> to vector<2x16x32xf32>
    %58 = vector.extract_strided_slice %55 {offsets = [1, 0, 0, 0], sizes = [1, 2, 16, 32], strides = [1, 1, 1, 1]} : vector<4x2x16x32xf32> to vector<1x2x16x32xf32>
    %59 = vector.shape_cast %58 : vector<1x2x16x32xf32> to vector<2x16x32xf32>
    %60 = vector.extract_strided_slice %55 {offsets = [2, 0, 0, 0], sizes = [1, 2, 16, 32], strides = [1, 1, 1, 1]} : vector<4x2x16x32xf32> to vector<1x2x16x32xf32>
    %61 = vector.shape_cast %60 : vector<1x2x16x32xf32> to vector<2x16x32xf32>
    %62 = vector.extract_strided_slice %55 {offsets = [3, 0, 0, 0], sizes = [1, 2, 16, 32], strides = [1, 1, 1, 1]} : vector<4x2x16x32xf32> to vector<1x2x16x32xf32>
    %63 = vector.shape_cast %62 : vector<1x2x16x32xf32> to vector<2x16x32xf32>
    %64 = tpu.concatenate %57, %59, %61, %63 in 2 : vector<2x16x32xf32>, vector<2x16x32xf32>, vector<2x16x32xf32>, vector<2x16x32xf32> -> vector<2x16x128xf32>
    %65 = vector.shape_cast %64 : vector<2x16x128xf32> to vector<32x128xf32>
    %c0_16 = arith.constant 0 : index
    %c0_17 = arith.constant 0 : index
    %66 = vector.load %arg5[%c0_16, %c0_17] : memref<128x128xf32, #tpu.memory_space<vmem>>, vector<128x128xf32>
    %cst_18 = arith.constant dense<0.000000e+00> : vector<32x128xf32>
    %67 = tpu.matmul %65, %66, %cst_18 {dimension_numbers = #tpu.dot_dimension_numbers<[1], [0], [0], [1], [0, 0, 1, 1], [], []>} : vector<32x128xf32>, vector<128x128xf32>, vector<32x128xf32> -> vector<32x128xf32>
    %c0_19 = arith.constant 0 : index
    %c0_20 = arith.constant 0 : index
    %68 = vector.load %arg6[%c0_19, %c0_20] : memref<1x128xf32, #tpu.memory_space<vmem>>, vector<1x128xf32>
    %69 = vector.broadcast %68 : vector<1x128xf32> to vector<32x128xf32>
    %70 = arith.addf %67, %69 : vector<32x128xf32>
    %71 = arith.addf %7, %70 : vector<32x128xf32>
    %cst_21 = arith.constant dense<0.000000e+00> : vector<32xf32>
    %72 = vector.multi_reduction <add>, %71, %cst_21 [1] : vector<32x128xf32> to vector<32xf32>
    %73 = vector.shape_cast %72 : vector<32xf32> to vector<32x1xf32>
    %cst_22 = arith.constant 1.280000e+02 : f32
    %74 = vector.broadcast %cst_22 : f32 to vector<32x1xf32>
    %75 = arith.divf %73, %74 : vector<32x1xf32>
    %76 = vector.broadcast %75 : vector<32x1xf32> to vector<32x128xf32>
    %77 = arith.subf %71, %76 : vector<32x128xf32>
    %78 = arith.mulf %77, %77 : vector<32x128xf32>
    %cst_23 = arith.constant dense<0.000000e+00> : vector<32xf32>
    %79 = vector.multi_reduction <add>, %78, %cst_23 [1] : vector<32x128xf32> to vector<32xf32>
    %80 = vector.shape_cast %79 : vector<32xf32> to vector<32x1xf32>
    %cst_24 = arith.constant 1.280000e+02 : f32
    %81 = vector.broadcast %cst_24 : f32 to vector<32x1xf32>
    %82 = arith.divf %80, %81 : vector<32x1xf32>
    %83 = vector.broadcast %75 : vector<32x1xf32> to vector<32x128xf32>
    %84 = arith.subf %71, %83 : vector<32x128xf32>
    %cst_25 = arith.constant 9.99999974E-6 : f32
    %85 = vector.broadcast %cst_25 : f32 to vector<32x1xf32>
    %86 = arith.addf %82, %85 : vector<32x1xf32>
    %87 = math.rsqrt %86 : vector<32x1xf32>
    %88 = vector.broadcast %87 : vector<32x1xf32> to vector<32x128xf32>
    %89 = arith.mulf %84, %88 : vector<32x128xf32>
    %c0_26 = arith.constant 0 : index
    %c0_27 = arith.constant 0 : index
    %90 = vector.load %arg7[%c0_26, %c0_27] : memref<1x128xf32, #tpu.memory_space<vmem>>, vector<1x128xf32>
    %91 = vector.broadcast %90 : vector<1x128xf32> to vector<32x128xf32>
    %92 = arith.mulf %89, %91 : vector<32x128xf32>
    %c0_28 = arith.constant 0 : index
    %c0_29 = arith.constant 0 : index
    %93 = vector.load %arg8[%c0_28, %c0_29] : memref<1x128xf32, #tpu.memory_space<vmem>>, vector<1x128xf32>
    %94 = vector.broadcast %93 : vector<1x128xf32> to vector<32x128xf32>
    %95 = arith.addf %92, %94 : vector<32x128xf32>
    %96 = vector.shape_cast %95 : vector<32x128xf32> to vector<2x16x128xf32>
    %c0_30 = arith.constant 0 : index
    %c0_31 = arith.constant 0 : index
    %c0_32 = arith.constant 0 : index
    %97 = vector.load %arg9[%c0_30, %c0_31, %c0_32] : memref<2x16x128xf32, #tpu.memory_space<vmem>>, vector<2x16x128xf32>
    tpu.vector_store %arg9[%c0_30, %c0_31, %c0_32], %96 {strides = array<i32>} : memref<2x16x128xf32, #tpu.memory_space<vmem>>, vector<2x16x128xf32>,
    return
  }
  func.func @transform_0(%arg0: i32) -> (i32, i32, i32) {
    %c0_i32 = arith.constant 0 : i32
    %c0_i32_0 = arith.constant 0 : i32
    %c0_i32_1 = arith.constant 0 : i32
    return %arg0, %c0_i32, %c0_i32_0 : i32, i32, i32
  }
  func.func @transform_1(%arg0: i32) -> (i32, i32) {
    %c0_i32 = arith.constant 0 : i32
    %c0_i32_0 = arith.constant 0 : i32
    %c0_i32_1 = arith.constant 0 : i32
    return %c0_i32, %c0_i32_0 : i32, i32
  }
  func.func @transform_2(%arg0: i32) -> (i32, i32) {
    %c0_i32 = arith.constant 0 : i32
    %c0_i32_0 = arith.constant 0 : i32
    %c0_i32_1 = arith.constant 0 : i32
    return %c0_i32, %c0_i32_0 : i32, i32
  }
  func.func @transform_3(%arg0: i32) -> (i32, i32) {
    %c0_i32 = arith.constant 0 : i32
    %c0_i32_0 = arith.constant 0 : i32
    %c0_i32_1 = arith.constant 0 : i32
    return %c0_i32, %c0_i32_0 : i32, i32
  }
  func.func @transform_4(%arg0: i32) -> (i32, i32) {
    %c0_i32 = arith.constant 0 : i32
    %c0_i32_0 = arith.constant 0 : i32
    %c0_i32_1 = arith.constant 0 : i32
    return %c0_i32, %c0_i32_0 : i32, i32
  }
  func.func @transform_5(%arg0: i32) -> (i32, i32) {
    %c0_i32 = arith.constant 0 : i32
    %c0_i32_0 = arith.constant 0 : i32
    %c0_i32_1 = arith.constant 0 : i32
    return %c0_i32, %c0_i32_0 : i32, i32
  }
  func.func @transform_6(%arg0: i32) -> (i32, i32) {
    %c0_i32 = arith.constant 0 : i32
    %c0_i32_0 = arith.constant 0 : i32
    %c0_i32_1 = arith.constant 0 : i32
    return %c0_i32, %c0_i32_0 : i32, i32
  }
  func.func @transform_7(%arg0: i32) -> (i32, i32) {
    %c0_i32 = arith.constant 0 : i32
    %c0_i32_0 = arith.constant 0 : i32
    %c0_i32_1 = arith.constant 0 : i32
    return %c0_i32, %c0_i32_0 : i32, i32
  }
  func.func @transform_8(%arg0: i32) -> (i32, i32, i32) {
    %c0_i32 = arith.constant 0 : i32
    %c0_i32_0 = arith.constant 0 : i32
    %c0_i32_1 = arith.constant 0 : i32
    return %arg0, %c0_i32, %c0_i32_0 : i32, i32, i32
  }
}

</mosaic_0001>

<bundles_post_ra>
// kernel: tpu_custom_call.1
= control target key start
LH: loop header
LB: loop body
LE: loop exit
PB: predicated region body
PF: predicated region fallthrough
CT: control target
= control target key end

     0   :  { %13 = vsyncpa [#allocation3], 0  ;;  %s2135_s0 = inlined_call_operand.hbm [shape: f32[2,16,128], index: 0, kind: input, shape index: {}]   ;;  %s2136_s1 = inlined_call_operand.hbm [shape: f32[16,16], index: 1, kind: input, shape index: {}]   ;;  %s2137_s2 = inlined_call_operand.hbm [shape: f32[128,384], index: 2, kind: input, shape index: {}]   ;;  %s2138_s3 = inlined_call_operand.hbm [shape: f32[1,384], index: 3, kind: input, shape index: {}]   ;;  %s2139_s4 = inlined_call_operand.hbm [shape: f32[128,128], index: 4, kind: input, shape index: {}]   ;;  %s2140_s5 = inlined_call_operand.vmem [shape: f32[1,128], index: 5, kind: input, shape index: {}]   ;;  %s2141_s6 = inlined_call_operand.vmem [shape: f32[1,128], index: 6, kind: input, shape index: {}]   ;;  %s2142_s7 = inlined_call_operand.vmem [shape: f32[1,128], index: 7, kind: input, shape index: {}]   ;;  %s2143_s8 = inlined_call_operand.hbm [shape: f32[2,16,128], index: 8, kind: output, shape index: {}]  }
   0x1   :  { %14 = vsyncpa [#allocation6], 0 }
   0x2   :  { %15 = vsyncpa [#allocation9], 0 }
   0x3   :  { %16 = vsyncpa [#allocation4], 0  ;;  %s34_s29 = sshll.u32 %s2136_s1, 4  ;;  %s1720_s30 = smov [#allocation5]   ;;  %s35_s29 = int_to_ptr.hbm [resolvable:$true] %s34_s29 }
   0x4   :  { %s36_s9 = sshll.u32 %s1720_s30, 4  ;;  %s61_s12 = sshll.u32 %s2138_s3, 4  ;;  %s37_s9 = int_to_ptr.vmem [resolvable:$true] %s36_s9  ;;  %s62_s12 = int_to_ptr.hbm [resolvable:$true] %s61_s12 }
   0x5   :  { %s1721_s13 = smov 128   ;;  %s1722_s14 = smov 8  }
   0x6   :  { %42 = dma.hbm_to_vmem [thread:$0]  %s35_s29, 256, %s37_s9, [#allocation6], %s1721_s13, %s1721_s13, %s1722_s14  }
   0x7   :  { %s1723_s15 = smov [#allocation8]   ;;  %s21_s1 = sshll.u32 %s2135_s0, 4  ;;  %s22_s1 = int_to_ptr.hbm [resolvable:$true] %s21_s1 }
   0x8   :  { %s63_s16 = sshll.u32 %s1723_s15, 4  ;;  %s47_s3 = sshll.u32 %s2137_s2, 4  ;;  %s64_s16 = int_to_ptr.vmem [resolvable:$true] %s63_s16  ;;  %s48_s3 = int_to_ptr.hbm [resolvable:$true] %s47_s3 }
   0x9   :  { %66 = dma.hbm_to_vmem [thread:$0]  %s62_s12, 48, %s64_s16, [#allocation9]  }
   0xa   :  { %s1724_s21 = smov [#allocation2]   ;;  %s1725_s23 = smov [#allocation7]  }
   0xb   :  { %s23_s22 = sshll.u32 %s1724_s21, 4  ;;  %s49_s24 = sshll.u32 %s1725_s23, 4  ;;  %s24_s22 = int_to_ptr.vmem [resolvable:$true] %s23_s22  ;;  %s50_s24 = int_to_ptr.vmem [resolvable:$true] %s49_s24 }
   0xc   :  { %29 = dma.hbm_to_vmem [thread:$0]  %s22_s1, 512, %s24_s22, [#allocation3], %s1721_s13, %s1721_s13, %s1722_s14  }
   0xd   :  { %s1726_s25 = smov 384   ;;  %s1727_s0 = smov 24  }
   0xe   :  { %55 = dma.hbm_to_vmem [thread:$0]  %s48_s3, 6144, %s50_s24, [#allocation6], %s1726_s25, %s1726_s25, %s1727_s0  }
   0xf   :  { %s71_s28 = sshll.u32 %s2139_s4, 4  ;;  %s1728_s2 = smov [#allocation10]   ;;  %s72_s28 = int_to_ptr.hbm [resolvable:$true] %s71_s28 }
  0x10   :  { %s73_s29 = sshll.u32 %s1728_s2, 4  ;;  %s74_s29 = int_to_ptr.vmem [resolvable:$true] %s73_s29 }
  0x11   :  { %79 = dma.hbm_to_vmem [thread:$0]  %s72_s28, 2048, %s74_s29, [#allocation9], %s1721_s13, %s1721_s13, %s1722_s14  }
  0x12   :  { %1712 = dma.done.wait [#allocation3], 512  }
  0x13   :  { %1713 = vsyncadd [#allocation3], 4294966784 }
  0x14   :  { %1714 = dma.done.wait [#allocation6], 6400  }
  0x15   :  { %1715 = vsyncadd [#allocation6], 4294960896 }
  0x16   :  { %1716 = dma.done.wait [#allocation9], 2096  }
  0x17   :  { %1717 = vsyncadd [#allocation9], 4294965200  ;;  %v162_v0 = vld [vmem:[#allocation7 + $0x168] sm:$0xff]  ;;  %v159_v1 = vld [vmem:[#allocation7 + $0x150] sm:$0xff]  ;;  %s1729_s4 = smov 96   ;;  %s1730_s30 = smov 32  }
  0x18   :  { %173 = vmatpush.msra.mxu1 %v162_v0  ;;  %v156_v2 = vld [vmem:[#allocation7 + $0x138] sm:$0xff]  ;;  %v153_v3 = vld [vmem:[#allocation7 + $0x120] sm:$0xff]  ;;  %v150_v4 = vld [vmem:[#allocation7 + $0x108] sm:$0xff]  ;;  %s1731_s9 = smov 64   ;;  %vm422_vm0 = vcmask 261120   ;;  %vm685_vm2 = vcmask 130048  }
  0x19   :  { %v147_v5 = vld [vmem:[#allocation7 + $0xf0] sm:$0xff]  ;;  %v144_v6 = vld [vmem:[#allocation7 + $0xd8] sm:$0xff]  ;;  %v141_v7 = vld [vmem:[#allocation7 + $0xc0] sm:$0xff]  ;;  %vm1170_vm4 = vcmask 523264   ;;  %vm1175_vm5 = vcmask 785408   ;;  %s1346_s1 = sshll.u32 %s2143_s8, 4  ;;  %s1347_s1 = int_to_ptr.hbm [resolvable:$true] %s1346_s1 }
  0x1a   :  { %174 = vmatpush.msra.mxu1 %v159_v1  ;;  %v138_v8 = vld [vmem:[#allocation7 + $0xa8] sm:$0xff]  ;;  %v135_v9 = vld [vmem:[#allocation7 + $0x90] sm:$0xff]  ;;  %v132_v10 = vld [vmem:[#allocation7 + $0x78] sm:$0xff] }
  0x1b   :  { %v129_v11 = vld [vmem:[#allocation7 + $0x60] sm:$0xff]  ;;  %v126_v12 = vld [vmem:[#allocation7 + $0x48] sm:$0xff]  ;;  %v123_v13 = vld [vmem:[#allocation7 + $0x30] sm:$0xff] }
  0x1c   :  { %175 = vmatpush.msra.mxu1 %v156_v2  ;;  %v120_v14 = vld [vmem:[#allocation7 + $0x18] sm:$0xff]  ;;  %v117_v15 = vld [vmem:[#allocation7] sm:$0xff]  ;;  %v1804_v16 = vld [vmem:[#allocation2] sm:$0xff] }
  0x1d   :  { %v163_v17 = vld [vmem:[#allocation7 + $0x170] sm:$0xff]  ;;  %v160_v18 = vld [vmem:[#allocation7 + $0x158] sm:$0xff]  ;;  %v157_v19 = vld [vmem:[#allocation7 + $0x140] sm:$0xff] }
  0x1e   :  { %176 = vmatpush.msra.mxu1 %v153_v3  ;;  %v154_v20 = vld [vmem:[#allocation7 + $0x128] sm:$0xff]  ;;  %v1807_v21 = vld [vmem:[#allocation2 + $0x8] sm:$0xff]  ;;  %v151_v22 = vld [vmem:[#allocation7 + $0x110] sm:$0xff] }
  0x1f   :  { %v148_v23 = vld [vmem:[#allocation7 + $0xf8] sm:$0xff]  ;;  %v145_v24 = vld [vmem:[#allocation7 + $0xe0] sm:$0xff]  ;;  %v142_v25 = vld [vmem:[#allocation7 + $0xc8] sm:$0xff] }
  0x20   :  { %177 = vmatpush.msra.mxu1 %v150_v4  ;;  %v1810_v26 = vld [vmem:[#allocation2 + $0x10] sm:$0xff]  ;;  %v139_v27 = vld [vmem:[#allocation7 + $0xb0] sm:$0xff]  ;;  %v136_v28 = vld [vmem:[#allocation7 + $0x98] sm:$0xff] }
  0x21   :  { %v133_v29 = vld [vmem:[#allocation7 + $0x80] sm:$0xff]  ;;  %v130_v30 = vld [vmem:[#allocation7 + $0x68] sm:$0xff]  ;;  %v127_v32 = vld [vmem:[#allocation7 + $0x50] sm:$0xff] }
  0x22   :  { %178 = vmatpush.msra.mxu1 %v147_v5  ;;  %v1813_v31 = vld [vmem:[#allocation2 + $0x18] sm:$0xff]  ;;  %v124_v33 = vld [vmem:[#allocation7 + $0x38] sm:$0xff]  ;;  %v121_v34 = vld [vmem:[#allocation7 + $0x20] sm:$0xff] }
  0x23   :  { %v118_v35 = vld [vmem:[#allocation7 + $0x8] sm:$0xff]  ;;  %v1820_v39 = vld [vmem:[#allocation8] sm:$0x7] }
  0x24   :  { %179 = vmatpush.msra.mxu1 %v144_v6  ;;  %v167_v40 = vperm.slane %v1820_v39, 0  ;;  %v168_v48 = vperm.slane %v1820_v39, 1 }
  0x26   :  { %180 = vmatpush.msra.mxu1 %v141_v7 }
  0x28   :  { %181 = vmatpush.msra.mxu1 %v138_v8 }
  0x2a   :  { %182 = vmatpush.msra.mxu1 %v135_v9 }
  0x2c   :  { %183 = vmatpush.msra.mxu1 %v132_v10 }
  0x2e   :  { %184 = vmatpush.msra.mxu1 %v129_v11 }
  0x30   :  { %185 = vmatpush.msra.mxu1 %v126_v12 }
  0x32   :  { %186 = vmatpush.msra.mxu1 %v123_v13 }
  0x34   :  { %187 = vmatpush.msra.mxu1 %v120_v14 }
  0x36   :  { %188 = vmatpush.msra.mxu1 %v117_v15 }
  0x37   :  { %189 = vmatmul.f32.vlgmr.msra.gmra.mxu1 %v1804_v16 }
  0x38   :  { %202 = vmatpush.msrb.mxu1 %v163_v17 }
  0x3a   :  { %203 = vmatpush.msrb.mxu1 %v160_v18  ;;  %v164_v18 = vld [vmem:[#allocation7 + $0x178] sm:$0xff] }
  0x3b   :  { %231 = vmatpush.msra.mxu2 %v164_v18 }
  0x3c   :  { %204 = vmatpush.msrb.mxu1 %v157_v19  ;;  %v161_v19 = vld [vmem:[#allocation7 + $0x160] sm:$0xff] }
  0x3d   :  { %232 = vmatpush.msra.mxu2 %v161_v19 }
  0x3e   :  { %205 = vmatpush.msrb.mxu1 %v154_v20  ;;  %v158_v20 = vld [vmem:[#allocation7 + $0x148] sm:$0xff] }
  0x3f   :  { %192 = vmatmul.f32.gmra.mxu1 %v1807_v21  ;;  %233 = vmatpush.msra.mxu2 %v158_v20 }
  0x40   :  { %206 = vmatpush.msrb.mxu1 %v151_v22  ;;  %v155_v22 = vld [vmem:[#allocation7 + $0x130] sm:$0xff] }
  0x41   :  { %234 = vmatpush.msra.mxu2 %v155_v22 }
  0x42   :  { %207 = vmatpush.msrb.mxu1 %v148_v23  ;;  %v152_v23 = vld [vmem:[#allocation7 + $0x118] sm:$0xff] }
  0x43   :  { %235 = vmatpush.msra.mxu2 %v152_v23 }
  0x44   :  { %208 = vmatpush.msrb.mxu1 %v145_v24  ;;  %v149_v24 = vld [vmem:[#allocation7 + $0x100] sm:$0xff] }
  0x45   :  { %236 = vmatpush.msra.mxu2 %v149_v24 }
  0x46   :  { %209 = vmatpush.msrb.mxu1 %v142_v25  ;;  %v146_v25 = vld [vmem:[#allocation7 + $0xe8] sm:$0xff] }
  0x47   :  { %195 = vmatmul.f32.gmra.mxu1 %v1810_v26  ;;  %237 = vmatpush.msra.mxu2 %v146_v25 }
  0x48   :  { %210 = vmatpush.msrb.mxu1 %v139_v27  ;;  %v143_v27 = vld [vmem:[#allocation7 + $0xd0] sm:$0xff] }
  0x49   :  { %238 = vmatpush.msra.mxu2 %v143_v27 }
  0x4a   :  { %211 = vmatpush.msrb.mxu1 %v136_v28  ;;  %v140_v28 = vld [vmem:[#allocation7 + $0xb8] sm:$0xff] }
  0x4b   :  { %239 = vmatpush.msra.mxu2 %v140_v28 }
  0x4c   :  { %212 = vmatpush.msrb.mxu1 %v133_v29  ;;  %v137_v29 = vld [vmem:[#allocation7 + $0xa0] sm:$0xff] }
  0x4d   :  { %240 = vmatpush.msra.mxu2 %v137_v29 }
  0x4e   :  { %213 = vmatpush.msrb.mxu1 %v130_v30  ;;  %v134_v30 = vld [vmem:[#allocation7 + $0x88] sm:$0xff] }
  0x4f   :  { %198 = vmatmul.f32.gmra.mxu1 %v1813_v31  ;;  %241 = vmatpush.msra.mxu2 %v134_v30 }
  0x50   :  { %214 = vmatpush.msrb.mxu1 %v127_v32  ;;  %v131_v32 = vld [vmem:[#allocation7 + $0x70] sm:$0xff] }
  0x51   :  { %242 = vmatpush.msra.mxu2 %v131_v32 }
  0x52   :  { %215 = vmatpush.msrb.mxu1 %v124_v33  ;;  %v128_v33 = vld [vmem:[#allocation7 + $0x58] sm:$0xff] }
  0x53   :  { %243 = vmatpush.msra.mxu2 %v128_v33 }
  0x54   :  { %216 = vmatpush.msrb.mxu1 %v121_v34  ;;  %v125_v34 = vld [vmem:[#allocation7 + $0x40] sm:$0xff] }
  0x55   :  { %244 = vmatpush.msra.mxu2 %v125_v34 }
  0x56   :  { %217 = vmatpush.msrb.mxu1 %v118_v35  ;;  %v122_v35 = vld [vmem:[#allocation7 + $0x28] sm:$0xff] }
  0x57   :  { %218 = vmatmul.f32.vlgmr.msrb.gmra.mxu1 %v1804_v16  ;;  %245 = vmatpush.msra.mxu2 %v122_v35  ;;  %v1732_v35 = vmov -1e+30  }
  0x5f   :  { %221 = vmatmul.f32.gmra.mxu1 %v1807_v21 }
  0x67   :  { %224 = vmatmul.f32.gmra.mxu1 %v1810_v26 }
  0x6f   :  { %227 = vmatmul.f32.gmra.mxu1 %v1813_v31 }
  0xb4   :  { %v190_v36 = vpop.f32.mrf.mxu1 }
  0xb5   :  { %v191_v47 = vadd.f32 %v190_v36, %v167_v40  ;;  %v119_v36 = vld [vmem:[#allocation7 + $0x10] sm:$0xff] }
  0xb6   :  { %246 = vmatpush.msra.mxu2 %v119_v36 }
  0xb7   :  { %v380_v62 = vpack.c.bf16 %v191_v47, %v191_v47  ;;  %247 = vmatmul.f32.vlgmr.msra.gmra.mxu2 %v1804_v16 }
  0xb9   :  { %v414_v1 = vunpack.c.l.b16 %v380_v62 }
  0xbc   :  { %v193_v37 = vpop.f32.mrf.mxu1 }
  0xbd   :  { %v194_v45 = vadd.f32 %v193_v37, %v167_v40 }
  0xbf   :  { %v1417_v49 = vpack.i.bf16 %v194_v45, %v191_v47  ;;  %v381_v59 = vpack.c.bf16 %v194_v45, %v194_v45  ;;  %250 = vmatmul.f32.gmra.mxu2 %v1807_v21 }
  0xc1   :  { %v415_v63 = vunpack.c.l.b16 %v381_v59 }
  0xc3   :  { %v416_v2 = vpack.c.b16 %v415_v63, %v414_v1 }
  0xc4   :  { %v196_v38 = vpop.f32.mrf.mxu1 }
  0xc5   :  { %v197_v42 = vadd.f32 %v196_v38, %v167_v40 }
  0xc7   :  { %v382_v12 = vpack.c.bf16 %v197_v42, %v197_v42  ;;  %253 = vmatmul.f32.gmra.mxu2 %v1810_v26 }
  0xc9   :  { %v445_v15 = vunpack.c.l.b16 %v382_v12 }
  0xcc   :  { %v199_v41 = vpop.f32.mrf.mxu1 }
  0xcd   :  { %v200_v43 = vadd.f32 %v199_v41, %v167_v40 }
  0xcf   :  { %v1412_v44 = vpack.i.bf16 %v200_v43, %v197_v42  ;;  %v383_v10 = vpack.c.bf16 %v200_v43, %v200_v43  ;;  %256 = vmatmul.f32.gmra.mxu2 %v1813_v31 }
  0xd1   :  { %1413 = vrot.lane.b32.xlu2 %v1412_v44, %s1729_s4  ;;  %v446_v14 = vunpack.c.l.b16 %v383_v10  ;;  %v111_v10 = vld [vmem:[#allocation5] sm:$0xff] }
  0xd2   :  { %vm113_vm1 = vcmp.gt.f32.partialorder %v111_v10, 0.0 }
  0xd3   :  { %v447_v17 = vpack.c.b16 %v446_v14, %v445_v15  ;;  %v1852_v36 = vsel %vm113_vm1, 0.0, %v1732_v35 }
  0xd4   :  { %v219_v46 = vpop.f32.mrf.mxu1 }
  0xd5   :  { %v220_v50 = vadd.f32 %v219_v46, %v168_v48 }
  0xd7   :  { %v396_v53 = vpack.c.bf16 %v220_v50, %v220_v50 }
  0xd9   :  { %1418 = vrot.lane.b32.xlu2 %v1417_v49, %s1730_s30  ;;  %v419_v56 = vunpack.c.l.b16 %v396_v53 }
  0xdc   :  { %v222_v51 = vpop.f32.mrf.mxu1 }
  0xdd   :  { %v223_v52 = vadd.f32 %v222_v51, %v168_v48 }
  0xdf   :  { %v1392_v54 = vpack.i.bf16 %v223_v52, %v220_v50  ;;  %v397_v55 = vpack.c.bf16 %v223_v52, %v223_v52 }
  0xe1   :  { %1393 = vrot.lane.b32.xlu0 %v1392_v54, %s1729_s4  ;;  %1433 = vrot.lane.b32.xlu2 %v1417_v49, %s1731_s9  ;;  %v420_v57 = vunpack.c.l.b16 %v397_v55 }
  0xe3   :  { %v421_v58 = vpack.c.b16 %v420_v57, %v419_v56 }
  0xe4   :  { %v225_v60 = vpop.f32.mrf.mxu1 }
  0xe5   :  { %v427_v61 = vsel %vm422_vm0, %v421_v58, 0  ;;  %v226_v0 = vadd.f32 %v225_v60, %v168_v48 }
  0xe6   :  { %436 = vmatpush.bf16.xpose.msra.mxu3 %v427_v61 }
  0xe7   :  { %v398_v5 = vpack.c.bf16 %v226_v0, %v226_v0 }
  0xe9   :  { %1448 = vrot.lane.b32.xlu2 %v1412_v44, %s1731_s9  ;;  %1398 = vrot.lane.b32.xlu0 %v1417_v49, %s1729_s4  ;;  %v450_v8 = vunpack.c.l.b16 %v398_v5 }
  0xec   :  { %v228_v3 = vpop.f32.mrf.mxu1 }
  0xed   :  { %v229_v4 = vadd.f32 %v228_v3, %v168_v48  ;;  %1361 = vmatmul.msk.bf16.vlgmr.msra.gmra.mxu3 %vm422_vm0, %v416_v2 }
  0xef   :  { %v1402_v6 = vpack.i.bf16 %v229_v4, %v226_v0  ;;  %v399_v7 = vpack.c.bf16 %v229_v4, %v229_v4 }
  0xf1   :  { %1403 = vrot.lane.b32.xlu1 %v1402_v6, %s1729_s4  ;;  %1423 = vrot.lane.b32.xlu0 %v1392_v54, %s1731_s9  ;;  %v451_v9 = vunpack.c.l.b16 %v399_v7 }
  0xf3   :  { %v452_v11 = vpack.c.b16 %v451_v9, %v450_v8 }
  0xf5   :  { %v457_v13 = vsel %vm422_vm0, %v452_v11, 0 }
  0xf6   :  { %466 = vmatpush.bf16.xpose.msrb.mxu3 %v457_v13 }
  0xf9   :  { %1408 = vrot.lane.b32.xlu1 %v1392_v54, %s1730_s30  ;;  %1438 = vrot.lane.b32.xlu0 %v1412_v44, %s1730_s30 }
  0xfd   :  { %1362 = vmatmul.msk.bf16.vlgmr.msrb.gmra.mxu3 %vm422_vm0, %v447_v17 }
 0x101   :  { %1428 = vrot.lane.b32.xlu1 %v1402_v6, %s1730_s30 }
 0x109   :  { %1443 = vrot.lane.b32.xlu1 %v1402_v6, %s1731_s9 }
 0x12b   :  { %v1414_v37 = vpop.permute.xlu2 %1413 }
 0x12c   :  { %v1416_v0 = vunpack.i.h.bf16 %v1414_v37  ;;  %v1415_v1 = vunpack.i.l.bf16 %v1414_v37 }
 0x12e   :  { %v387_v11 = vpack.c.bf16 %v1416_v0, %v1416_v0  ;;  %v386_v12 = vpack.c.bf16 %v1415_v1, %v1415_v1 }
 0x130   :  { %v506_v27 = vunpack.c.l.b16 %v387_v11  ;;  %v505_v28 = vunpack.c.l.b16 %v386_v12 }
 0x133   :  { %v1844_v46 = vpop.permute.xlu2 %1418 }
 0x134   :  { %v1421_v22 = vunpack.i.h.bf16 %v1844_v46  ;;  %v1420_v23 = vunpack.i.l.bf16 %v1844_v46 }
 0x13b   :  { %v1434_v55 = vpop.permute.xlu2 %1433 }
 0x13c   :  { %v1436_v2 = vunpack.i.h.bf16 %v1434_v55  ;;  %v1435_v3 = vunpack.i.l.bf16 %v1434_v55 }
 0x13e   :  { %v389_v13 = vpack.c.bf16 %v1436_v2, %v1436_v2  ;;  %v388_v15 = vpack.c.bf16 %v1435_v3, %v1435_v3 }
 0x140   :  { %v536_v29 = vunpack.c.l.b16 %v389_v13  ;;  %v535_v30 = vunpack.c.l.b16 %v388_v15 }
 0x153   :  { %v1394_v38 = vpop.permute.xlu0 %1393 }
 0x154   :  { %v1396_v40 = vunpack.i.h.bf16 %v1394_v38  ;;  %v1395_v41 = vunpack.i.l.bf16 %v1394_v38  ;;  %v393_v38 = vpack.c.bf16 %v1421_v22, %v1421_v22 }
 0x156   :  { %v401_v42 = vpack.c.bf16 %v1396_v40, %v1396_v40  ;;  %v400_v43 = vpack.c.bf16 %v1395_v41, %v1395_v41  ;;  %v392_v40 = vpack.c.bf16 %v1420_v23, %v1420_v23 }
 0x158   :  { %v481_v44 = vunpack.c.l.b16 %v401_v42  ;;  %v480_v45 = vunpack.c.l.b16 %v400_v43  ;;  %v112_v42 = vld [vmem:[#allocation5 + $0x8] sm:$0xff]  ;;  %v507_v43 = vpack.c.b16 %v506_v27, %v505_v28 }
 0x159   :  { %vm114_vm3 = vcmp.gt.f32.partialorder %v112_v42, 0.0 }
 0x15a   :  { %v482_v47 = vpack.c.b16 %v481_v44, %v480_v45 }
 0x15b   :  { %v1399_v48 = vpop.permute.xlu0 %1398 }
 0x15c   :  { %v1401_v49 = vunpack.i.h.bf16 %v1399_v48  ;;  %v1400_v16 = vunpack.i.l.bf16 %v1399_v48  ;;  %v487_v21 = vsel %vm422_vm0, %v482_v47, 0 }
 0x15d   :  { %496 = vmatpush.bf16.xpose.msra.mxu3 %v487_v21 }
 0x15e   :  { %v385_v26 = vpack.c.bf16 %v1401_v49, %v1401_v49  ;;  %v384_v50 = vpack.c.bf16 %v1400_v16, %v1400_v16  ;;  %v537_v49 = vpack.c.b16 %v536_v29, %v535_v30 }
 0x160   :  { %v476_v31 = vunpack.c.l.b16 %v385_v26  ;;  %v475_v51 = vunpack.c.l.b16 %v384_v50  ;;  %v596_v26 = vunpack.c.l.b16 %v393_v38  ;;  %v595_v50 = vunpack.c.l.b16 %v392_v40 }
 0x162   :  { %v477_v52 = vpack.c.b16 %v476_v31, %v475_v51 }
 0x163   :  { %v1404_v53 = vpop.permute.xlu1 %1403  ;;  %v1424_v54 = vpop.permute.xlu0 %1423 }
 0x164   :  { %v1406_v56 = vunpack.i.h.bf16 %v1404_v53  ;;  %v1405_v57 = vunpack.i.l.bf16 %v1404_v53  ;;  %v1426_v58 = vunpack.i.h.bf16 %v1424_v54  ;;  %v1425_v59 = vunpack.i.l.bf16 %v1424_v54  ;;  %1363 = vmatmul.msk.bf16.vlgmr.msra.gmra.mxu3 %vm422_vm0, %v477_v52 }
 0x166   :  { %v403_v60 = vpack.c.bf16 %v1406_v56, %v1406_v56  ;;  %v402_v61 = vpack.c.bf16 %v1405_v57, %v1405_v57  ;;  %v405_v62 = vpack.c.bf16 %v1426_v58, %v1426_v58  ;;  %v404_v63 = vpack.c.bf16 %v1425_v59, %v1425_v59 }
 0x167   :  { %v1862_v57 = vsel %vm114_vm3, 0.0, %v1732_v35  ;;  %v597_v59 = vpack.c.b16 %v596_v26, %v595_v50  ;;  %v169_v35 = vperm.slane %v1820_v39, 2 }
 0x168   :  { %v511_v4 = vunpack.c.l.b16 %v403_v60  ;;  %v510_v5 = vunpack.c.l.b16 %v402_v61  ;;  %v541_v6 = vunpack.c.l.b16 %v405_v62  ;;  %v540_v7 = vunpack.c.l.b16 %v404_v63  ;;  %v1449_v61 = vpop.permute.xlu2 %1448 }
 0x16a   :  { %v512_v8 = vpack.c.b16 %v511_v4, %v510_v5  ;;  %v542_v9 = vpack.c.b16 %v541_v6, %v540_v7  ;;  %v1451_v6 = vunpack.i.h.bf16 %v1449_v61  ;;  %v1450_v7 = vunpack.i.l.bf16 %v1449_v61 }
 0x16b   :  { %v1409_v14 = vpop.permute.xlu1 %1408  ;;  %v1439_v46 = vpop.permute.xlu0 %1438 }
 0x16c   :  { %v1411_v17 = vunpack.i.h.bf16 %v1409_v14  ;;  %v1410_v18 = vunpack.i.l.bf16 %v1409_v14  ;;  %v517_v19 = vsel %vm422_vm0, %v512_v8, 0  ;;  %v547_v20 = vsel %vm422_vm0, %v542_v9, 0 }
 0x16d   :  { %526 = vmatpush.bf16.xpose.msrb.mxu3 %v517_v19  ;;  %556 = vmatpush.bf16.xpose.msra.mxu0 %v547_v20  ;;  %v1441_v52 = vunpack.i.h.bf16 %v1439_v46  ;;  %v1440_v53 = vunpack.i.l.bf16 %v1439_v46 }
 0x16e   :  { %v409_v24 = vpack.c.bf16 %v1411_v17, %v1411_v17  ;;  %v408_v25 = vpack.c.bf16 %v1410_v18, %v1410_v18  ;;  %v391_v17 = vpack.c.bf16 %v1451_v6, %v1451_v6  ;;  %v390_v18 = vpack.c.bf16 %v1450_v7, %v1450_v7 }
 0x16f   :  { %v395_v62 = vpack.c.bf16 %v1441_v52, %v1441_v52  ;;  %v394_v63 = vpack.c.bf16 %v1440_v53, %v1440_v53 }
 0x170   :  { %v601_v32 = vunpack.c.l.b16 %v409_v24  ;;  %v600_v33 = vunpack.c.l.b16 %v408_v25  ;;  %v438_v34 = vpop.f32.mrf.mxu3  ;;  %v566_v25 = vunpack.c.l.b16 %v391_v17  ;;  %v565_v27 = vunpack.c.l.b16 %v390_v18 }
 0x171   :  { %v653_v37 = vmul.f32 0.17677669, %v438_v34  ;;  %v626_v10 = vunpack.c.l.b16 %v395_v62  ;;  %v625_v11 = vunpack.c.l.b16 %v394_v63  ;;  %v248_v34 = vpop.f32.mrf.mxu2 }
 0x172   :  { %v602_v41 = vpack.c.b16 %v601_v32, %v600_v33  ;;  %v567_v30 = vpack.c.b16 %v566_v25, %v565_v27 }
 0x173   :  { %v1429_v44 = vpop.permute.xlu1 %1428  ;;  %v1855_v45 = vadd.f32 %v653_v37, %v1852_v36  ;;  %v627_v20 = vpack.c.b16 %v626_v10, %v625_v11  ;;  %v249_v37 = vadd.f32 %v248_v34, %v169_v35 }
 0x174   :  { %v1431_v47 = vunpack.i.h.bf16 %v1429_v44  ;;  %v1430_v48 = vunpack.i.l.bf16 %v1429_v44  ;;  %v607_v16 = vsel %vm422_vm0, %v602_v41, 0  ;;  %1364 = vmatmul.msk.bf16.vlgmr.msrb.gmra.mxu3 %vm422_vm0, %v507_v43  ;;  %1365 = vmatmul.msk.bf16.vlgmr.msra.gmra.mxu0 %vm422_vm0, %v537_v49 }
 0x175   :  { %616 = vmatpush.bf16.xpose.msrb.mxu2 %v607_v16  ;;  %v686_v21 = vsel %vm685_vm2, %v1855_v45, -inf  ;;  %v878_v40 = vpack.c.bf16 %v249_v37, %v249_v37 }
 0x176   :  { %v411_v31 = vpack.c.bf16 %v1431_v47, %v1431_v47  ;;  %v410_v51 = vpack.c.bf16 %v1430_v48, %v1430_v48  ;;  %687 = vmax.xlane.f32.xlu2 %v686_v21 }
 0x177   :  { %v901_v43 = vunpack.c.l.b16 %v878_v40 }
 0x178   :  { %v631_v54 = vunpack.c.l.b16 %v411_v31  ;;  %v630_v55 = vunpack.c.l.b16 %v410_v51  ;;  %v440_v56 = vpop.f32.mrf.mxu3 }
 0x179   :  { %v654_v58 = vmul.f32 0.17677669, %v440_v56  ;;  %v251_v38 = vpop.f32.mrf.mxu2 }
 0x17a   :  { %v632_v60 = vpack.c.b16 %v631_v54, %v630_v55  ;;  %v252_v41 = vadd.f32 %v251_v38, %v169_v35 }
 0x17b   :  { %v1444_v0 = vpop.permute.xlu1 %1443  ;;  %v1865_v1 = vadd.f32 %v654_v58, %v1862_v57 }
 0x17c   :  { %v1446_v2 = vunpack.i.h.bf16 %v1444_v0  ;;  %v1445_v3 = vunpack.i.l.bf16 %v1444_v0  ;;  %1367 = vmatmul.msk.bf16.vlgmr.msrb.gmra.mxu2 %vm422_vm0, %v597_v59  ;;  %v637_v4 = vsel %vm422_vm0, %v632_v60, 0  ;;  %v879_v42 = vpack.c.bf16 %v252_v41, %v252_v41 }
 0x17d   :  { %646 = vmatpush.bf16.xpose.msra.mxu3 %v637_v4  ;;  %v689_v5 = vsel %vm685_vm2, %v1865_v1, -inf  ;;  %v1885_v46 = vpack.i.bf16 %v252_v41, %v249_v37 }
 0x17e   :  { %v407_v8 = vpack.c.bf16 %v1446_v2, %v1446_v2  ;;  %v406_v9 = vpack.c.bf16 %v1445_v3, %v1445_v3  ;;  %690 = vmax.xlane.f32.xlu2 %v689_v5  ;;  %v902_v44 = vunpack.c.l.b16 %v879_v42 }
 0x180   :  { %v571_v12 = vunpack.c.l.b16 %v407_v8  ;;  %v570_v13 = vunpack.c.l.b16 %v406_v9  ;;  %v468_v14 = vpop.f32.mrf.mxu3  ;;  %v903_v47 = vpack.c.b16 %v902_v44, %v901_v43 }
 0x181   :  { %v655_v15 = vmul.f32 0.17677669, %v468_v14  ;;  %v254_v48 = vpop.f32.mrf.mxu2 }
 0x182   :  { %v572_v19 = vpack.c.b16 %v571_v12, %v570_v13  ;;  %v255_v49 = vadd.f32 %v254_v48, %v169_v35 }
 0x183   :  { %v1872_v22 = vadd.f32 %v655_v15, %v1852_v36 }
 0x184   :  { %v577_v23 = vsel %vm422_vm0, %v572_v19, 0  ;;  %1368 = vmatmul.msk.bf16.vlgmr.msra.gmra.mxu3 %vm422_vm0, %v627_v20  ;;  %v880_v16 = vpack.c.bf16 %v255_v49, %v255_v49 }
 0x185   :  { %586 = vmatpush.bf16.xpose.msrb.mxu0 %v577_v23  ;;  %v692_v24 = vsel %vm685_vm2, %v1872_v22, -inf }
 0x186   :  { %693 = vmax.xlane.f32.xlu1 %v692_v24  ;;  %v929_v50 = vunpack.c.l.b16 %v880_v16 }
 0x188   :  { %v470_v28 = vpop.f32.mrf.mxu3 }
 0x189   :  { %v656_v29 = vmul.f32 0.17677669, %v470_v28  ;;  %v257_v21 = vpop.f32.mrf.mxu2 }
 0x18a   :  { %v258_v26 = vadd.f32 %v257_v21, %v169_v35 }
 0x18b   :  { %v1879_v32 = vadd.f32 %v656_v29, %v1862_v57 }
 0x18c   :  { %1366 = vmatmul.msk.bf16.vlgmr.msrb.gmra.mxu0 %vm422_vm0, %v567_v30  ;;  %v881_v31 = vpack.c.bf16 %v258_v26, %v258_v26  ;;  %v1887_v51 = vpack.i.bf16 %v258_v26, %v255_v49 }
 0x18d   :  { %v695_v33 = vsel %vm685_vm2, %v1879_v32, -inf  ;;  %915 = vmatpush.bf16.msra.mxu0 %v903_v47 }
 0x18e   :  { %696 = vmax.xlane.f32.xlu2 %v695_v33  ;;  %v930_v39 = vunpack.c.l.b16 %v881_v31 }
 0x190   :  { %v931_v52 = vpack.c.b16 %v930_v39, %v929_v50 }
 0x192   :  { %943 = vmatpush.bf16.msra.mxu1 %v931_v52 }
 0x1e7   :  { %v498_v53 = vpop.f32.mrf.mxu3 }
 0x1e8   :  { %v657_v58 = vmul.f32 0.17677669, %v498_v53 }
 0x1e9   :  { %v688_v59 = vpop.xlane.xlu2 %687 }
 0x1ea   :  { %v734_v62 = vsub.f32 %v1855_v45, %v688_v59  ;;  %v1896_v2 = vadd.f32 %v657_v58, %v1852_v36 }
 0x1ec   :  { %v750_v4 = vmul.f32 1.442695, %v734_v62  ;;  %v698_v9 = vsel %vm685_vm2, %v1896_v2, -inf }
 0x1ee   :  { %1490 = vpow2.f32 %v750_v4 }
 0x1ef   :  { %v500_v61 = vpop.f32.mrf.mxu3 }
 0x1f0   :  { %v658_v6 = vmul.f32 0.17677669, %v500_v61 }
 0x1f1   :  { %v558_v54 = vpop.f32.mrf.mxu0  ;;  %v691_v14 = vpop.xlane.xlu2 %690 }
 0x1f2   :  { %v661_v55 = vmul.f32 0.17677669, %v558_v54  ;;  %v1911_v12 = vadd.f32 %v658_v6, %v1862_v57  ;;  %v735_v25 = vsub.f32 %v1865_v1, %v691_v14 }
 0x1f4   :  { %v1890_v56 = vadd.f32 %v661_v55, %v1852_v36  ;;  %v701_v17 = vsel %vm685_vm2, %v1911_v12, -inf  ;;  %v1915_v18 = vpop.eup %1490  ;;  %v752_v37 = vmul.f32 1.442695, %v735_v25 }
 0x1f5   :  { %v782_v28 = vsel %vm685_vm2, %v1915_v18, 0.0 }
 0x1f6   :  { %v710_v60 = vsel %vm685_vm2, %v1890_v56, -inf  ;;  %1492 = vpow2.f32 %v752_v37 }
 0x1f7   :  { %711 = vmax.xlane.f32.xlu0 %v710_v60  ;;  %v528_v10 = vpop.f32.mrf.mxu3 }
 0x1f8   :  { %v659_v27 = vmul.f32 0.17677669, %v528_v10 }
 0x1f9   :  { %v560_v63 = vpop.f32.mrf.mxu0  ;;  %v694_v20 = vpop.xlane.xlu1 %693 }
 0x1fa   :  { %v662_v0 = vmul.f32 0.17677669, %v560_v63  ;;  %v736_v33 = vsub.f32 %v1872_v22, %v694_v20  ;;  %v1932_v38 = vadd.f32 %v659_v27, %v1852_v36 }
 0x1fc   :  { %v1899_v3 = vadd.f32 %v662_v0, %v1862_v57  ;;  %v754_v40 = vmul.f32 1.442695, %v736_v33  ;;  %v704_v43 = vsel %vm685_vm2, %v1932_v38, -inf  ;;  %v1946_v49 = vpop.eup %1492 }
 0x1fd   :  { %v785_v26 = vsel %vm685_vm2, %v1946_v49, 0.0 }
 0x1fe   :  { %v713_v8 = vsel %vm685_vm2, %v1899_v3, -inf  ;;  %1494 = vpow2.f32 %v754_v40 }
 0x1ff   :  { %v618_v5 = vpop.f32.mrf.mxu2  ;;  %714 = vmax.xlane.f32.xlu1 %v713_v8  ;;  %699 = vmax.xlane.f32.xlu0 %v698_v9  ;;  %v530_v34 = vpop.f32.mrf.mxu3 }
 0x200   :  { %v665_v7 = vmul.f32 0.17677669, %v618_v5  ;;  %v660_v1 = vmul.f32 0.17677669, %v530_v34 }
 0x201   :  { %v697_v53 = vpop.xlane.xlu2 %696 }
 0x202   :  { %v1906_v45 = vadd.f32 %v665_v7, %v1852_v36  ;;  %v1940_v44 = vadd.f32 %v660_v1, %v1862_v57  ;;  %v737_v54 = vsub.f32 %v1879_v32, %v697_v53 }
 0x204   :  { %v722_v11 = vsel %vm685_vm2, %v1906_v45, -inf  ;;  %v707_v48 = vsel %vm685_vm2, %v1940_v44, -inf  ;;  %v1948_v16 = vpop.eup %1494  ;;  %v756_v55 = vmul.f32 1.442695, %v737_v54 }
 0x205   :  { %723 = vmax.xlane.f32.xlu2 %v722_v11  ;;  %v788_v31 = vsel %vm685_vm2, %v1948_v16, 0.0 }
 0x206   :  { %1496 = vpow2.f32 %v756_v55 }
 0x207   :  { %v620_v13 = vpop.f32.mrf.mxu2  ;;  %702 = vmax.xlane.f32.xlu1 %v701_v17  ;;  %v648_v21 = vpop.f32.mrf.mxu3 }
 0x208   :  { %v666_v15 = vmul.f32 0.17677669, %v620_v13  ;;  %v667_v50 = vmul.f32 0.17677669, %v648_v21 }
 0x209   :  { %v588_v19 = vpop.f32.mrf.mxu0 }
 0x20a   :  { %v663_v23 = vmul.f32 0.17677669, %v588_v19  ;;  %v1918_v24 = vadd.f32 %v666_v15, %v1862_v57  ;;  %v1955_v39 = vadd.f32 %v667_v50, %v1852_v36 }
 0x20c   :  { %v725_v29 = vsel %vm685_vm2, %v1918_v24, -inf  ;;  %v1926_v30 = vadd.f32 %v663_v23, %v1852_v36  ;;  %v728_v52 = vsel %vm685_vm2, %v1955_v39, -inf  ;;  %v1964_v58 = vpop.eup %1496 }
 0x20d   :  { %783 = vadd.xlane.f32.xlu2 %v782_v28  ;;  %726 = vmax.xlane.f32.xlu0 %v725_v29  ;;  %v791_v60 = vsel %vm685_vm2, %v1964_v58, 0.0 }
 0x20e   :  { %v716_v35 = vsel %vm685_vm2, %v1926_v30, -inf }
 0x20f   :  { %717 = vmax.xlane.f32.xlu1 %v716_v35  ;;  %v650_v59 = vpop.f32.mrf.mxu3 }
 0x210   :  { %v668_v36 = vmul.f32 0.17677669, %v650_v59 }
 0x211   :  { %v590_v41 = vpop.f32.mrf.mxu0 }
 0x212   :  { %v664_v42 = vmul.f32 0.17677669, %v590_v41  ;;  %v1969_v61 = vadd.f32 %v668_v36, %v1862_v57 }
 0x214   :  { %v1937_v22 = vadd.f32 %v664_v42, %v1862_v57  ;;  %v731_v62 = vsel %vm685_vm2, %v1969_v61, -inf }
 0x215   :  { %705 = vmax.xlane.f32.xlu0 %v704_v43 }
 0x216   :  { %v719_v47 = vsel %vm685_vm2, %v1937_v22, -inf }
 0x217   :  { %720 = vmax.xlane.f32.xlu2 %v719_v47  ;;  %708 = vmax.xlane.f32.xlu1 %v707_v48 }
 0x21d   :  { %786 = vadd.xlane.f32.xlu0 %v785_v26 }
 0x21f   :  { %789 = vadd.xlane.f32.xlu2 %v788_v31 }
 0x227   :  { %729 = vmax.xlane.f32.xlu2 %v728_v52 }
 0x230   :  { %1453 = vrot.lane.b32.xlu1 %v1885_v46, %s1729_s4 }
 0x231   :  { %1458 = vrot.lane.b32.xlu0 %v1887_v51, %s1729_s4 }
 0x25b   :  { %792 = vadd.xlane.f32.xlu0 %v791_v60 }
 0x263   :  { %732 = vmax.xlane.f32.xlu0 %v731_v62 }
 0x26a   :  { %v712_v63 = vpop.xlane.xlu0 %711 }
 0x26b   :  { %v742_v32 = vsub.f32 %v1890_v56, %v712_v63 }
 0x26d   :  { %v766_v0 = vmul.f32 1.442695, %v742_v32 }
 0x26f   :  { %1498 = vpow2.f32 %v766_v0 }
 0x272   :  { %v715_v4 = vpop.xlane.xlu1 %714  ;;  %v700_v5 = vpop.xlane.xlu0 %699 }
 0x273   :  { %v738_v6 = vsub.f32 %v1896_v2, %v700_v5  ;;  %v743_v11 = vsub.f32 %v1899_v3, %v715_v4 }
 0x275   :  { %v1975_v7 = vpop.eup %1498  ;;  %v758_v8 = vmul.f32 1.442695, %v738_v6  ;;  %v768_v15 = vmul.f32 1.442695, %v743_v11 }
 0x276   :  { %v806_v57 = vsel %vm685_vm2, %v1975_v7, 0.0 }
 0x277   :  { %807 = vadd.xlane.f32.xlu1 %v806_v57  ;;  %1500 = vpow2.f32 %v758_v8 }
 0x278   :  { %v724_v9 = vpop.xlane.xlu2 %723 }
 0x279   :  { %v746_v10 = vsub.f32 %v1906_v45, %v724_v9 }
 0x27a   :  { %v703_v13 = vpop.xlane.xlu1 %702 }
 0x27b   :  { %v774_v56 = vmul.f32 1.442695, %v746_v10  ;;  %v739_v14 = vsub.f32 %v1911_v12, %v703_v13 }
 0x27d   :  { %1502 = vpow2.f32 %v774_v56  ;;  %v760_v2 = vmul.f32 1.442695, %v739_v14  ;;  %v1982_v17 = vpop.eup %1500 }
 0x27e   :  { %v794_v20 = vsel %vm685_vm2, %v1982_v17, 0.0 }
 0x27f   :  { %1504 = vpow2.f32 %v760_v2  ;;  %795 = vadd.xlane.f32.xlu0 %v794_v20 }
 0x280   :  { %v727_v19 = vpop.xlane.xlu0 %726  ;;  %v784_v45 = vpop.xlane.xlu2 %783  ;;  %1506 = vpow2.f32 %v768_v15 }
 0x281   :  { %v747_v23 = vsub.f32 %v1918_v24, %v727_v19 }
 0x282   :  { %v718_v27 = vpop.xlane.xlu1 %717 }
 0x283   :  { %v1987_v25 = vpop.eup %1502  ;;  %v776_v3 = vmul.f32 1.442695, %v747_v23  ;;  %v744_v28 = vsub.f32 %v1926_v30, %v718_v27 }
 0x284   :  { %v818_v12 = vsel %vm685_vm2, %v1987_v25, 0.0 }
 0x285   :  { %1508 = vpow2.f32 %v776_v3  ;;  %819 = vadd.xlane.f32.xlu2 %v818_v12  ;;  %v1992_v29 = vpop.eup %1504  ;;  %v770_v33 = vmul.f32 1.442695, %v744_v28 }
 0x286   :  { %v797_v24 = vsel %vm685_vm2, %v1992_v29, 0.0  ;;  %v1996_v35 = vpop.eup %1506 }
 0x287   :  { %1510 = vpow2.f32 %v770_v33  ;;  %798 = vadd.xlane.f32.xlu1 %v797_v24  ;;  %v809_v42 = vsel %vm685_vm2, %v1996_v35, 0.0 }
 0x288   :  { %v706_v34 = vpop.xlane.xlu0 %705  ;;  %1512 = vrcp.f32 %v784_v45 }
 0x289   :  { %v740_v37 = vsub.f32 %v1932_v38, %v706_v34 }
 0x28a   :  { %v721_v1 = vpop.xlane.xlu2 %720  ;;  %v709_v60 = vpop.xlane.xlu1 %708 }
 0x28b   :  { %v1999_v40 = vpop.eup %1508  ;;  %v762_v41 = vmul.f32 1.442695, %v740_v37  ;;  %v745_v30 = vsub.f32 %v1937_v22, %v721_v1  ;;  %v741_v20 = vsub.f32 %v1940_v44, %v709_v60 }
 0x28c   :  { %v821_v43 = vsel %vm685_vm2, %v1999_v40, 0.0 }
 0x28d   :  { %1514 = vpow2.f32 %v762_v41  ;;  %v772_v47 = vmul.f32 1.442695, %v745_v30  ;;  %810 = vadd.xlane.f32.xlu2 %v809_v42  ;;  %822 = vadd.xlane.f32.xlu0 %v821_v43  ;;  %v2006_v48 = vpop.eup %1510  ;;  %v764_v23 = vmul.f32 1.442695, %v741_v20 }
 0x28e   :  { %v812_v38 = vsel %vm685_vm2, %v2006_v48, 0.0  ;;  %v1513_v22 = vpop.eup %1512 }
 0x28f   :  { %1516 = vpow2.f32 %v772_v47  ;;  %813 = vadd.xlane.f32.xlu1 %v812_v38  ;;  %v846_v52 = vmul.f32 %v1513_v22, %v1915_v18 }
 0x290   :  { %v787_v21 = vpop.xlane.xlu0 %786 }
 0x291   :  { %1518 = vrcp.f32 %v787_v21  ;;  %v862_v55 = vpack.c.bf16 %v846_v52, %v846_v52 }
 0x292   :  { %v790_v19 = vpop.xlane.xlu2 %789  ;;  %1520 = vpow2.f32 %v764_v23 }
 0x293   :  { %v2010_v26 = vpop.eup %1514  ;;  %v896_v62 = vunpack.c.l.b16 %v862_v55  ;;  %1522 = vrcp.f32 %v790_v19 }
 0x294   :  { %v800_v50 = vsel %vm685_vm2, %v2010_v26, 0.0 }
 0x295   :  { %v2014_v31 = vpop.eup %1516  ;;  %801 = vadd.xlane.f32.xlu2 %v800_v50 }
 0x296   :  { %v815_v53 = vsel %vm685_vm2, %v2014_v31, 0.0 }
 0x297   :  { %v1519_v54 = vpop.eup %1518  ;;  %816 = vadd.xlane.f32.xlu1 %v815_v53 }
 0x298   :  { %v847_v59 = vmul.f32 %v1519_v54, %v1946_v49  ;;  %v2029_v12 = vpop.eup %1520 }
 0x299   :  { %v803_v28 = vsel %vm685_vm2, %v2029_v12, 0.0 }
 0x29a   :  { %v863_v36 = vpack.c.bf16 %v847_v59, %v847_v59  ;;  %v730_v45 = vpop.xlane.xlu2 %729 }
 0x29b   :  { %v748_v3 = vsub.f32 %v1955_v39, %v730_v45 }
 0x29c   :  { %v897_v63 = vunpack.c.l.b16 %v863_v36 }
 0x29d   :  { %v778_v27 = vmul.f32 1.442695, %v748_v3 }
 0x29e   :  { %v898_v32 = vpack.c.b16 %v897_v63, %v896_v62 }
 0x29f   :  { %1524 = vpow2.f32 %v778_v27 }
 0x2a0   :  { %1369 = vmatmul.msk.bf16.vlgmr.msra.gmra.mxu0 %vm685_vm2, %v898_v32 }
 0x2a1   :  { %1468 = vrot.lane.b32.xlu0 %v1885_v46, %s1731_s9 }
 0x2a2   :  { %v1454_v0 = vpop.permute.xlu1 %1453 }
 0x2a3   :  { %v1459_v18 = vpop.permute.xlu0 %1458  ;;  %v1456_v6 = vunpack.i.h.bf16 %v1454_v0  ;;  %v1455_v8 = vunpack.i.l.bf16 %v1454_v0 }
 0x2a4   :  { %v1461_v4 = vunpack.i.h.bf16 %v1459_v18  ;;  %v1460_v5 = vunpack.i.l.bf16 %v1459_v18 }
 0x2a5   :  { %v883_v49 = vpack.c.bf16 %v1456_v6, %v1456_v6  ;;  %v882_v10 = vpack.c.bf16 %v1455_v8, %v1455_v8 }
 0x2a6   :  { %v885_v57 = vpack.c.bf16 %v1461_v4, %v1461_v4  ;;  %v884_v9 = vpack.c.bf16 %v1460_v5, %v1460_v5 }
 0x2a7   :  { %v958_v13 = vunpack.c.l.b16 %v883_v49  ;;  %v957_v14 = vunpack.c.l.b16 %v882_v10 }
 0x2a8   :  { %v986_v11 = vunpack.c.l.b16 %v885_v57  ;;  %v985_v56 = vunpack.c.l.b16 %v884_v9 }
 0x2a9   :  { %v959_v2 = vpack.c.b16 %v958_v13, %v957_v14 }
 0x2aa   :  { %v987_v15 = vpack.c.b16 %v986_v11, %v985_v56 }
 0x2ab   :  { %971 = vmatpush.bf16.msra.mxu2 %v959_v2 }
 0x2ac   :  { %999 = vmatpush.bf16.msrb.mxu3 %v987_v15 }
 0x2ad   :  { %1463 = vrot.lane.b32.xlu2 %v1885_v46, %s1730_s30  ;;  %v1523_v46 = vpop.eup %1522 }
 0x2ae   :  { %v2033_v24 = vpop.eup %1524  ;;  %v848_v44 = vmul.f32 %v1523_v46, %v1948_v16 }
 0x2af   :  { %v824_v34 = vsel %vm685_vm2, %v2033_v24, 0.0 }
 0x2b0   :  { %1473 = vrot.lane.b32.xlu1 %v1887_v51, %s1730_s30  ;;  %v864_v37 = vpack.c.bf16 %v848_v44, %v848_v44 }
 0x2b2   :  { %v924_v47 = vunpack.c.l.b16 %v864_v37 }
 0x2cb   :  { %804 = vadd.xlane.f32.xlu0 %v803_v28 }
 0x2ce   :  { %v793_v33 = vpop.xlane.xlu0 %792 }
 0x2cf   :  { %1526 = vrcp.f32 %v793_v33 }
 0x2d3   :  { %825 = vadd.xlane.f32.xlu0 %v824_v34 }
 0x2d5   :  { %v1527_v39 = vpop.eup %1526 }
 0x2d6   :  { %v849_v1 = vmul.f32 %v1527_v39, %v1964_v58  ;;  %v733_v41 = vpop.xlane.xlu0 %732 }
 0x2d7   :  { %v749_v30 = vsub.f32 %v1969_v61, %v733_v41 }
 0x2d8   :  { %v865_v42 = vpack.c.bf16 %v849_v1, %v849_v1 }
 0x2d9   :  { %v780_v43 = vmul.f32 1.442695, %v749_v30 }
 0x2da   :  { %v925_v38 = vunpack.c.l.b16 %v865_v42 }
 0x2db   :  { %1528 = vpow2.f32 %v780_v43 }
 0x2dc   :  { %v926_v21 = vpack.c.b16 %v925_v38, %v924_v47 }
 0x2de   :  { %1370 = vmatmul.msk.bf16.vlgmr.msra.gmra.mxu1 %vm685_vm2, %v926_v21 }
 0x2e1   :  { %v2041_v16 = vpop.eup %1528 }
 0x2e2   :  { %v827_v22 = vsel %vm685_vm2, %v2041_v16, 0.0 }
 0x2e3   :  { %828 = vadd.xlane.f32.xlu2 %v827_v22 }
 0x2e7   :  { %1478 = vrot.lane.b32.xlu0 %v1887_v51, %s1731_s9 }
 0x2ea   :  { %v808_v58 = vpop.xlane.xlu1 %807 }
 0x2f2   :  { %v796_v50 = vpop.xlane.xlu0 %795 }
 0x2f3   :  { %1530 = vrcp.f32 %v796_v50 }
 0x2f8   :  { %v820_v61 = vpop.xlane.xlu2 %819 }
 0x2f9   :  { %v1531_v53 = vpop.eup %1530 }
 0x2fa   :  { %v799_v52 = vpop.xlane.xlu1 %798  ;;  %v850_v54 = vmul.f32 %v1531_v53, %v1982_v17 }
 0x2fb   :  { %1532 = vrcp.f32 %v799_v52 }
 0x2fc   :  { %v866_v60 = vpack.c.bf16 %v850_v54, %v850_v54 }
 0x2fe   :  { %v952_v32 = vunpack.c.l.b16 %v866_v60 }
 0x300   :  { %v811_v55 = vpop.xlane.xlu2 %810  ;;  %v823_v59 = vpop.xlane.xlu0 %822 }
 0x301   :  { %v1533_v36 = vpop.eup %1532  ;;  %1534 = vrcp.f32 %v823_v59 }
 0x302   :  { %v851_v62 = vmul.f32 %v1533_v36, %v1992_v29  ;;  %1536 = vrcp.f32 %v820_v61  ;;  %v814_v56 = vpop.xlane.xlu1 %813 }
 0x303   :  { %1538 = vrcp.f32 %v811_v55 }
 0x304   :  { %v867_v63 = vpack.c.bf16 %v851_v62, %v851_v62  ;;  %1540 = vrcp.f32 %v808_v58 }
 0x306   :  { %v953_v51 = vunpack.c.l.b16 %v867_v63 }
 0x307   :  { %v1535_v4 = vpop.eup %1534 }
 0x308   :  { %v802_v18 = vpop.xlane.xlu2 %801  ;;  %v954_v0 = vpack.c.b16 %v953_v51, %v952_v32  ;;  %v1537_v5 = vpop.eup %1536  ;;  %v859_v6 = vmul.f32 %v1535_v4, %v1999_v40 }
 0x309   :  { %v1539_v17 = vpop.eup %1538  ;;  %v858_v57 = vmul.f32 %v1537_v5, %v1987_v25  ;;  %1542 = vrcp.f32 %v802_v18 }
 0x30a   :  { %1371 = vmatmul.msk.bf16.vlgmr.msra.gmra.mxu2 %vm685_vm2, %v954_v0  ;;  %v1541_v8 = vpop.eup %1540  ;;  %v855_v9 = vmul.f32 %v1539_v17, %v1996_v35  ;;  %v875_v11 = vpack.c.bf16 %v859_v6, %v859_v6  ;;  %v817_v41 = vpop.xlane.xlu1 %816 }
 0x30b   :  { %v854_v13 = vmul.f32 %v1541_v8, %v1975_v7  ;;  %v874_v19 = vpack.c.bf16 %v858_v57, %v858_v57 }
 0x30c   :  { %v871_v45 = vpack.c.bf16 %v855_v9, %v855_v9  ;;  %v1065_v27 = vunpack.c.l.b16 %v875_v11 }
 0x30d   :  { %v870_v46 = vpack.c.bf16 %v854_v13, %v854_v13  ;;  %v1064_v33 = vunpack.c.l.b16 %v874_v19 }
 0x30e   :  { %v1009_v39 = vunpack.c.l.b16 %v871_v45 }
 0x30f   :  { %v1066_v7 = vpack.c.b16 %v1065_v27, %v1064_v33  ;;  %v1008_v1 = vunpack.c.l.b16 %v870_v46  ;;  %v1543_v52 = vpop.eup %1542 }
 0x310   :  { %v1464_v29 = vpop.permute.xlu2 %1463  ;;  %v852_v53 = vmul.f32 %v1543_v52, %v2010_v26  ;;  %v1184_v52 = vld [vmem:[#allocation10 + $0x20] sm:$0xff] }
 0x311   :  { %v1466_v49 = vunpack.i.h.bf16 %v1464_v29  ;;  %v1465_v10 = vunpack.i.l.bf16 %v1464_v29  ;;  %v1010_v30 = vpack.c.b16 %v1009_v39, %v1008_v1  ;;  %v1194_v39 = vld [vmem:[#allocation10 + $0x70] sm:$0xff]  ;;  %v1192_v1 = vld [vmem:[#allocation10 + $0x60] sm:$0xff] }
 0x312   :  { %v868_v55 = vpack.c.bf16 %v852_v53, %v852_v53  ;;  %v1183_v53 = vld [vmem:[#allocation10 + $0x18] sm:$0xff] }
 0x313   :  { %v891_v14 = vpack.c.bf16 %v1466_v49, %v1466_v49  ;;  %v890_v15 = vpack.c.bf16 %v1465_v10, %v1465_v10  ;;  %v1469_v2 = vpop.permute.xlu0 %1468 }
 0x314   :  { %v1471_v20 = vunpack.i.h.bf16 %v1469_v2  ;;  %v1470_v23 = vunpack.i.l.bf16 %v1469_v2  ;;  %v980_v60 = vunpack.c.l.b16 %v868_v55  ;;  %v1182_v55 = vld [vmem:[#allocation10 + $0x10] sm:$0xff] }
 0x315   :  { %v1070_v40 = vunpack.c.l.b16 %v891_v14  ;;  %v1069_v3 = vunpack.c.l.b16 %v890_v15 }
 0x316   :  { %v887_v25 = vpack.c.bf16 %v1471_v20, %v1471_v20  ;;  %v886_v28 = vpack.c.bf16 %v1470_v23, %v1470_v23 }
 0x317   :  { %v1071_v35 = vpack.c.b16 %v1070_v40, %v1069_v3 }
 0x318   :  { %v1014_v44 = vunpack.c.l.b16 %v887_v25  ;;  %v1013_v34 = vunpack.c.l.b16 %v886_v28 }
 0x319   :  { %1083 = vmatpush.bf16.msrb.mxu2 %v1071_v35 }
 0x31a   :  { %v1015_v37 = vpack.c.b16 %v1014_v44, %v1013_v34  ;;  %v1195_v34 = vld [vmem:[#allocation10 + $0x78] sm:$0xff] }
 0x31c   :  { %1027 = vmatpush.bf16.msrb.mxu0 %v1015_v37  ;;  %1375 = vmatmul.msk.bf16.vlgmr.msrb.gmra.mxu2 %vm685_vm2, %v1066_v7  ;;  %v1193_v7 = vld [vmem:[#allocation10 + $0x68] sm:$0xff] }
 0x31d   :  { %v2065_v45 = vpop.f32.mrf.mxu0 }
 0x31f   :  { %1373 = vmatmul.msk.bf16.vlgmr.msrb.gmra.mxu0 %vm685_vm2, %v1010_v30  ;;  %v1191_v30 = vld [vmem:[#allocation10 + $0x58] sm:$0xff] }
 0x320   :  { %1200 = vmatpush.msra.mxu0 %v1195_v34  ;;  %v1733_v34 = vmov 128.0  }
 0x322   :  { %v1474_v42 = vpop.permute.xlu1 %1473  ;;  %1201 = vmatpush.msra.mxu0 %v1194_v39 }
 0x323   :  { %v1476_v43 = vunpack.i.h.bf16 %v1474_v42  ;;  %v1475_v47 = vunpack.i.l.bf16 %v1474_v42  ;;  %v1190_v42 = vld [vmem:[#allocation10 + $0x50] sm:$0xff] }
 0x324   :  { %1202 = vmatpush.msra.mxu0 %v1193_v7 }
 0x325   :  { %v893_v38 = vpack.c.bf16 %v1476_v43, %v1476_v43  ;;  %v892_v21 = vpack.c.bf16 %v1475_v47, %v1475_v47  ;;  %v2067_v3 = vpop.f32.mrf.mxu0  ;;  %v1189_v43 = vld [vmem:[#allocation10 + $0x48] sm:$0xff]  ;;  %v1188_v47 = vld [vmem:[#allocation10 + $0x40] sm:$0xff] }
 0x326   :  { %1203 = vmatpush.msra.mxu0 %v1192_v1 }
 0x327   :  { %v1098_v22 = vunpack.c.l.b16 %v893_v38  ;;  %v1097_v58 = vunpack.c.l.b16 %v892_v21  ;;  %v1187_v21 = vld [vmem:[#allocation10 + $0x38] sm:$0xff] }
 0x328   :  { %1204 = vmatpush.msra.mxu0 %v1191_v30 }
 0x329   :  { %v1099_v50 = vpack.c.b16 %v1098_v22, %v1097_v58  ;;  %v1186_v22 = vld [vmem:[#allocation10 + $0x30] sm:$0xff]  ;;  %v1185_v58 = vld [vmem:[#allocation10 + $0x28] sm:$0xff] }
 0x32a   :  { %1205 = vmatpush.msra.mxu0 %v1190_v42 }
 0x32b   :  { %1111 = vmatpush.bf16.msra.mxu3 %v1099_v50 }
 0x32c   :  { %1206 = vmatpush.msra.mxu0 %v1189_v43 }
 0x32e   :  { %1207 = vmatpush.msra.mxu0 %v1188_v47 }
 0x330   :  { %1208 = vmatpush.msra.mxu0 %v1187_v21 }
 0x332   :  { %1209 = vmatpush.msra.mxu0 %v1186_v22 }
 0x334   :  { %1210 = vmatpush.msra.mxu0 %v1185_v58 }
 0x336   :  { %1211 = vmatpush.msra.mxu0 %v1184_v52 }
 0x338   :  { %1212 = vmatpush.msra.mxu0 %v1183_v53 }
 0x33a   :  { %1213 = vmatpush.msra.mxu0 %v1182_v55 }
 0x33e   :  { %v805_v61 = vpop.xlane.xlu0 %804 }
 0x33f   :  { %1544 = vrcp.f32 %v805_v61 }
 0x340   :  { %1546 = vrcp.f32 %v817_v41 }
 0x341   :  { %1548 = vrcp.f32 %v814_v56 }
 0x345   :  { %v1545_v54 = vpop.eup %1544 }
 0x346   :  { %v853_v59 = vmul.f32 %v1545_v54, %v2029_v12  ;;  %v826_v32 = vpop.xlane.xlu0 %825  ;;  %v1547_v51 = vpop.eup %1546 }
 0x347   :  { %1550 = vrcp.f32 %v826_v32  ;;  %v1549_v18 = vpop.eup %1548  ;;  %v857_v26 = vmul.f32 %v1547_v51, %v2014_v31 }
 0x348   :  { %v869_v36 = vpack.c.bf16 %v853_v59, %v853_v59  ;;  %v856_v5 = vmul.f32 %v1549_v18, %v2006_v48  ;;  %v1181_v59 = vld [vmem:[#allocation10 + $0x8] sm:$0xff] }
 0x349   :  { %v873_v57 = vpack.c.bf16 %v857_v26, %v857_v26  ;;  %1214 = vmatpush.msra.mxu0 %v1181_v59 }
 0x34a   :  { %v981_v62 = vunpack.c.l.b16 %v869_v36  ;;  %v872_v10 = vpack.c.bf16 %v856_v5, %v856_v5  ;;  %v1180_v36 = vld [vmem:[#allocation10] sm:$0xff] }
 0x34b   :  { %v1037_v15 = vunpack.c.l.b16 %v873_v57  ;;  %1215 = vmatpush.msra.mxu0 %v1180_v36 }
 0x34c   :  { %v982_v63 = vpack.c.b16 %v981_v62, %v980_v60  ;;  %v1036_v19 = vunpack.c.l.b16 %v872_v10 }
 0x34d   :  { %v1551_v4 = vpop.eup %1550 }
 0x34e   :  { %1372 = vmatmul.msk.bf16.vlgmr.msrb.gmra.mxu3 %vm685_vm2, %v982_v63  ;;  %v860_v17 = vmul.f32 %v1551_v4, %v2033_v24  ;;  %v1038_v24 = vpack.c.b16 %v1037_v15, %v1036_v19 }
 0x350   :  { %v876_v11 = vpack.c.bf16 %v860_v17, %v860_v17 }
 0x352   :  { %v1092_v48 = vunpack.c.l.b16 %v876_v11 }
 0x356   :  { %v829_v0 = vpop.xlane.xlu2 %828 }
 0x357   :  { %1552 = vrcp.f32 %v829_v0 }
 0x358   :  { %1554 = vrcp.f32 %v1733_v34 }
 0x359   :  { %v1479_v12 = vpop.permute.xlu0 %1478 }
 0x35a   :  { %v1481_v6 = vunpack.i.h.bf16 %v1479_v12  ;;  %v1480_v8 = vunpack.i.l.bf16 %v1479_v12 }
 0x35b   :  { %v2074_v33 = vpop.f32.mrf.mxu1 }
 0x35c   :  { %v889_v29 = vpack.c.bf16 %v1481_v6, %v1481_v6  ;;  %v888_v9 = vpack.c.bf16 %v1480_v8, %v1480_v8 }
 0x35d   :  { %v1553_v49 = vpop.eup %1552 }
 0x35e   :  { %v861_v56 = vmul.f32 %v1553_v49, %v2041_v16  ;;  %v1042_v13 = vunpack.c.l.b16 %v889_v29  ;;  %v1041_v14 = vunpack.c.l.b16 %v888_v9  ;;  %v1555_v39 = vpop.eup %1554 }
 0x35f   :  { %v1242_v7 = vmul.f32 128.0, %v1555_v39  ;;  %vm1246_vm6 = vweird.f32 %v1555_v39 }
 0x360   :  { %v877_v31 = vpack.c.bf16 %v861_v56, %v861_v56  ;;  %v1043_v2 = vpack.c.b16 %v1042_v13, %v1041_v14 }
 0x362   :  { %v1093_v20 = vunpack.c.l.b16 %v877_v31  ;;  %1055 = vmatpush.bf16.msrb.mxu1 %v1043_v2  ;;  %v1487_v2 = vld [vmem:[%s2140_s5] ss:$0 sm:$0xff] }
 0x363   :  { %v2077_v41 = vpop.f32.mrf.mxu1 }
 0x364   :  { %v1094_v23 = vpack.c.b16 %v1093_v20, %v1092_v48  ;;  %v1564_v20 = vld [vmem:[#allocation2] sm:$0xff] }
 0x365   :  { %1374 = vmatmul.msk.bf16.vlgmr.msrb.gmra.mxu1 %vm685_vm2, %v1038_v24 }
 0x366   :  { %1376 = vmatmul.msk.bf16.vlgmr.msra.gmra.mxu3 %vm685_vm2, %v1094_v23 }
 0x38d   :  { %v973_v40 = vpop.f32.mrf.mxu2 }
 0x395   :  { %v975_v16 = vpop.f32.mrf.mxu2 }
 0x396   :  { %v1482_v27 = vpack.i.bf16 %v975_v16, %v973_v40  ;;  %v1565_v40 = vld [vmem:[#allocation2 + $0x8] sm:$0xff] }
 0x398   :  { %1483 = vrot.lane.b32.xlu2 %v1482_v27, %s1730_s30 }
 0x39c   :  { %v1029_v25 = vpop.f32.mrf.mxu0 }
 0x39d   :  { %1138 = vrot.lane.b32.xlu1 %v1029_v25, %s1731_s9  ;;  %v1566_v25 = vld [vmem:[#allocation2 + $0x10] sm:$0xff] }
 0x39f   :  { %v1085_v28 = vpop.f32.mrf.mxu2 }
 0x3a4   :  { %v1031_v46 = vpop.f32.mrf.mxu0 }
 0x3a5   :  { %1154 = vrot.lane.b32.xlu1 %v1085_v28, %s1729_s4  ;;  %1140 = vrot.lane.b32.xlu0 %v1031_v46, %s1731_s9 }
 0x3a7   :  { %v1087_v35 = vpop.f32.mrf.mxu2 }
 0x3ad   :  { %1156 = vrot.lane.b32.xlu1 %v1087_v35, %s1729_s4 }
 0x3d1   :  { %v1001_v44 = vpop.f32.mrf.mxu3 }
 0x3d2   :  { %1126 = vrot.lane.b32.xlu2 %v1001_v44, %s1730_s30 }
 0x3d9   :  { %v1003_v37 = vpop.f32.mrf.mxu3 }
 0x3da   :  { %1128 = vrot.lane.b32.xlu2 %v1003_v37, %s1730_s30  ;;  %v1243_v37 = vsub.f32 1.0, %v1242_v7 }
 0x3dc   :  { %v1244_v1 = vmul.f32 %v1555_v39, %v1243_v37 }
 0x3e2   :  { %v1057_v38 = vpop.f32.mrf.mxu1 }
 0x3e3   :  { %1142 = vrot.lane.b32.xlu0 %v1057_v38, %s1731_s9 }
 0x3e9   :  { %v1113_v50 = vpop.f32.mrf.mxu3 }
 0x3ea   :  { %v1059_v61 = vpop.f32.mrf.mxu1  ;;  %1158 = vrot.lane.b32.xlu1 %v1113_v50, %s1729_s4 }
 0x3eb   :  { %1144 = vrot.lane.b32.xlu0 %v1059_v61, %s1731_s9 }
 0x3f1   :  { %v1115_v54 = vpop.f32.mrf.mxu3 }
 0x3f2   :  { %1160 = vrot.lane.b32.xlu1 %v1115_v54, %s1729_s4  ;;  %v1484_v60 = vpop.permute.xlu2 %1483 }
 0x3f3   :  { %v1485_v63 = vunpack.i.l.bf16 %v1484_v60  ;;  %v1486_v4 = vunpack.i.h.bf16 %v1484_v60 }
 0x3f5   :  { %v1166_v32 = vsel %vm422_vm0, %v2065_v45, %v1485_v63  ;;  %v1167_v5 = vsel %vm422_vm0, %v2067_v3, %v1486_v4 }
 0x40f   :  { %v1139_v62 = vpop.permute.xlu1 %1138 }
 0x410   :  { %v1171_v51 = vsel %vm1170_vm4, %v1166_v32, %v1139_v62 }
 0x417   :  { %v1155_v18 = vpop.permute.xlu1 %1154  ;;  %v1141_v26 = vpop.permute.xlu0 %1140 }
 0x418   :  { %v1176_v0 = vsel %vm1175_vm5, %v1171_v51, %v1155_v18  ;;  %v1172_v12 = vsel %vm1170_vm4, %v1167_v5, %v1141_v26 }
 0x419   :  { %1216 = vmatmul.f32.vlgmr.msra.gmra.mxu0 %v1176_v0 }
 0x41f   :  { %v1157_v17 = vpop.permute.xlu1 %1156 }
 0x420   :  { %v1177_v6 = vsel %vm1175_vm5, %v1172_v12, %v1157_v17 }
 0x421   :  { %1219 = vmatmul.f32.gmra.mxu0 %v1177_v6 }
 0x42c   :  { %v1127_v8 = vpop.permute.xlu2 %1126 }
 0x42d   :  { %v1168_v29 = vsel %vm422_vm0, %v2074_v33, %v1127_v8  ;;  %v1567_v33 = vld [vmem:[#allocation2 + $0x18] sm:$0xff] }
 0x434   :  { %v1129_v11 = vpop.permute.xlu2 %1128 }
 0x435   :  { %v1169_v13 = vsel %vm422_vm0, %v2077_v41, %v1129_v11  ;;  %v1245_v41 = vadd.f32 %v1555_v39, %v1244_v1  ;;  %v1489_v11 = vld [vmem:[%s2142_s7] ss:$0 sm:$0xff] }
 0x437   :  { %v2103_v30 = vsel %vm1246_vm6, %v1555_v39, %v1245_v41 }
 0x455   :  { %v1143_v57 = vpop.permute.xlu0 %1142 }
 0x456   :  { %v1173_v9 = vsel %vm1170_vm4, %v1168_v29, %v1143_v57  ;;  %v1488_v29 = vld [vmem:[%s2141_s6] ss:$0 sm:$0xff]  ;;  %s1734_s6 = smov [#allocation11]  }
 0x457   :  { %s1344_s7 = sshll.u32 %s1734_s6, 4  ;;  %s1345_s7 = int_to_ptr.vmem [resolvable:$true] %s1344_s7 }
 0x45c   :  { %v1159_v49 = vpop.permute.xlu1 %1158 }
 0x45d   :  { %v1178_v10 = vsel %vm1175_vm5, %v1173_v9, %v1159_v49  ;;  %v1145_v56 = vpop.permute.xlu0 %1144 }
 0x45e   :  { %1222 = vmatmul.f32.gmra.mxu0 %v1178_v10  ;;  %v1174_v14 = vsel %vm1170_vm4, %v1169_v13, %v1145_v56 }
 0x464   :  { %v1161_v15 = vpop.permute.xlu1 %1160 }
 0x465   :  { %v1179_v31 = vsel %vm1175_vm5, %v1174_v14, %v1161_v15 }
 0x466   :  { %1225 = vmatmul.f32.gmra.mxu0 %v1179_v31 }
 0x496   :  { %v1217_v19 = vpop.f32.mrf.mxu0 }
 0x497   :  { %v1218_v48 = vadd.f32 %v1487_v2, %v1217_v19 }
 0x499   :  { %v1229_v24 = vadd.f32 %v1564_v20, %v1218_v48 }
 0x49b   :  { %1233 = vadd.xlane.f32.xlu2 %v1229_v24 }
 0x49e   :  { %v1220_v23 = vpop.f32.mrf.mxu0 }
 0x49f   :  { %v1221_v45 = vadd.f32 %v1487_v2, %v1220_v23 }
 0x4a1   :  { %v1230_v3 = vadd.f32 %v1565_v40, %v1221_v45 }
 0x4a3   :  { %1235 = vadd.xlane.f32.xlu0 %v1230_v3 }
 0x4db   :  { %v1223_v16 = vpop.f32.mrf.mxu0 }
 0x4dc   :  { %v1224_v27 = vadd.f32 %v1487_v2, %v1223_v16 }
 0x4de   :  { %v1231_v28 = vadd.f32 %v1566_v25, %v1224_v27 }
 0x4e0   :  { %1237 = vadd.xlane.f32.xlu1 %v1231_v28 }
 0x4e3   :  { %v1226_v46 = vpop.f32.mrf.mxu0 }
 0x4e4   :  { %v1227_v35 = vadd.f32 %v1487_v2, %v1226_v46 }
 0x4e6   :  { %v1232_v44 = vadd.f32 %v1567_v33, %v1227_v35 }
 0x4e8   :  { %1239 = vadd.xlane.f32.xlu2 %v1232_v44 }
 0x50e   :  { %v1234_v42 = vpop.xlane.xlu2 %1233 }
 0x50f   :  { %v1248_v43 = vmul.f32 %v2103_v30, %v1234_v42 }
 0x511   :  { %v1252_v47 = vsub.f32 %v1229_v24, %v1248_v43 }
 0x513   :  { %v1256_v38 = vmul.f32 %v1252_v47, %v1252_v47 }
 0x515   :  { %1260 = vadd.xlane.f32.xlu0 %v1256_v38 }
 0x516   :  { %v1236_v21 = vpop.xlane.xlu0 %1235 }
 0x517   :  { %v1249_v22 = vmul.f32 %v2103_v30, %v1236_v21 }
 0x519   :  { %v1253_v58 = vsub.f32 %v1230_v3, %v1249_v22 }
 0x51b   :  { %v1257_v50 = vmul.f32 %v1253_v58, %v1253_v58 }
 0x51d   :  { %1262 = vadd.xlane.f32.xlu1 %v1257_v50 }
 0x553   :  { %v1238_v61 = vpop.xlane.xlu1 %1237 }
 0x554   :  { %v1250_v52 = vmul.f32 %v2103_v30, %v1238_v61 }
 0x556   :  { %v2108_v53 = vsub.f32 %v1231_v28, %v1250_v52 }
 0x558   :  { %v1258_v54 = vmul.f32 %v2108_v53, %v2108_v53 }
 0x55a   :  { %1264 = vadd.xlane.f32.xlu2 %v1258_v54 }
 0x55b   :  { %v1240_v55 = vpop.xlane.xlu2 %1239 }
 0x55c   :  { %v1251_v59 = vmul.f32 %v2103_v30, %v1240_v55 }
 0x55e   :  { %v2113_v36 = vsub.f32 %v1232_v44, %v1251_v59 }
 0x560   :  { %v1259_v60 = vmul.f32 %v2113_v36, %v2113_v36 }
 0x562   :  { %1266 = vadd.xlane.f32.xlu0 %v1259_v60 }
 0x588   :  { %v1261_v62 = vpop.xlane.xlu0 %1260 }
 0x589   :  { %v1268_v63 = vmul.f32 %v1261_v62, %v2103_v30 }
 0x58b   :  { %v1272_v32 = vadd.f32 1e-05, %v1268_v63 }
 0x58d   :  { %1556 = vrsqrt.f32 %v1272_v32  ;;  %vm1282_vm8 = vweird.f32 %v1272_v32 }
 0x590   :  { %v1263_v51 = vpop.xlane.xlu1 %1262 }
 0x591   :  { %v1269_v18 = vmul.f32 %v1263_v51, %v2103_v30 }
 0x593   :  { %v1557_v0 = vpop.eup %1556  ;;  %v1273_v4 = vadd.f32 1e-05, %v1269_v18 }
 0x594   :  { %v1277_v26 = vmul.f32 %v1557_v0, %v1272_v32  ;;  %vm1283_vm7 = vweird.f32 %v1557_v0 }
 0x595   :  { %1558 = vrsqrt.f32 %v1273_v4  ;;  %vm1284_vm9 = vmor %vm1282_vm8, %vm1283_vm7  ;;  %vm1292_vm11 = vweird.f32 %v1273_v4 }
 0x596   :  { %v1278_v5 = vmul.f32 %v1557_v0, %v1277_v26 }
 0x598   :  { %v1279_v12 = vmul.f32 0.5, %v1278_v5 }
 0x59a   :  { %v1280_v17 = vsub.f32 1.5, %v1279_v12 }
 0x59b   :  { %v1559_v6 = vpop.eup %1558 }
 0x59c   :  { %v1281_v8 = vmul.f32 %v1557_v0, %v1280_v17  ;;  %v1287_v57 = vmul.f32 %v1559_v6, %v1273_v4  ;;  %vm1293_vm10 = vweird.f32 %v1559_v6 }
 0x59d   :  { %vm1294_vm12 = vmor %vm1292_vm11, %vm1293_vm10 }
 0x59e   :  { %v1285_v9 = vsel %vm1284_vm9, %v1557_v0, %v1281_v8  ;;  %v1288_v49 = vmul.f32 %v1559_v6, %v1287_v57 }
 0x59f   :  { %v1316_v10 = vmul.f32 %v1285_v9, %v1252_v47 }
 0x5a0   :  { %v1289_v56 = vmul.f32 0.5, %v1288_v49 }
 0x5a1   :  { %v1324_v13 = vmul.f32 %v1488_v29, %v1316_v10 }
 0x5a2   :  { %v1290_v14 = vsub.f32 1.5, %v1289_v56 }
 0x5a3   :  { %v1332_v15 = vadd.f32 %v1489_v11, %v1324_v13 }
 0x5a4   :  { %v1291_v31 = vmul.f32 %v1559_v6, %v1290_v14 }
 0x5a5   :  { %1336 = vst [vmem:[#allocation11] sm:$0xff] %v1332_v15 }
 0x5a6   :  { %v1295_v2 = vsel %vm1294_vm12, %v1559_v6, %v1291_v31 }
 0x5a7   :  { %v1317_v19 = vmul.f32 %v1295_v2, %v1253_v58 }
 0x5a9   :  { %v1325_v48 = vmul.f32 %v1488_v29, %v1317_v19 }
 0x5ab   :  { %v1333_v20 = vadd.f32 %v1489_v11, %v1325_v48 }
 0x5ad   :  { %1337 = vst [vmem:[#allocation11 + $0x8] sm:$0xff] %v1333_v20 }
 0x5cd   :  { %v1265_v24 = vpop.xlane.xlu2 %1264 }
 0x5ce   :  { %v1270_v23 = vmul.f32 %v1265_v24, %v2103_v30 }
 0x5d0   :  { %v1274_v45 = vadd.f32 1e-05, %v1270_v23 }
 0x5d2   :  { %1560 = vrsqrt.f32 %v1274_v45  ;;  %vm1302_vm14 = vweird.f32 %v1274_v45 }
 0x5d5   :  { %v1267_v40 = vpop.xlane.xlu0 %1266 }
 0x5d6   :  { %v1271_v3 = vmul.f32 %v1267_v40, %v2103_v30 }
 0x5d8   :  { %v1561_v16 = vpop.eup %1560  ;;  %v1275_v27 = vadd.f32 1e-05, %v1271_v3 }
 0x5d9   :  { %v1297_v25 = vmul.f32 %v1561_v16, %v1274_v45  ;;  %vm1303_vm13 = vweird.f32 %v1561_v16 }
 0x5da   :  { %1562 = vrsqrt.f32 %v1275_v27  ;;  %vm1304_vm15 = vmor %vm1302_vm14, %vm1303_vm13  ;;  %vm1312_vm1 = vweird.f32 %v1275_v27 }
 0x5db   :  { %v1298_v28 = vmul.f32 %v1561_v16, %v1297_v25 }
 0x5dd   :  { %v1299_v46 = vmul.f32 0.5, %v1298_v28 }
 0x5df   :  { %v1300_v35 = vsub.f32 1.5, %v1299_v46 }
 0x5e0   :  { %v1563_v33 = vpop.eup %1562 }
 0x5e1   :  { %v1301_v44 = vmul.f32 %v1561_v16, %v1300_v35  ;;  %v1307_v34 = vmul.f32 %v1563_v33, %v1275_v27  ;;  %vm1313_vm0 = vweird.f32 %v1563_v33 }
 0x5e2   :  { %vm1314_vm2 = vmor %vm1312_vm1, %vm1313_vm0 }
 0x5e3   :  { %v1305_v39 = vsel %vm1304_vm15, %v1561_v16, %v1301_v44  ;;  %v1308_v7 = vmul.f32 %v1563_v33, %v1307_v34 }
 0x5e4   :  { %v1318_v37 = vmul.f32 %v1305_v39, %v2108_v53 }
 0x5e5   :  { %v1309_v1 = vmul.f32 0.5, %v1308_v7 }
 0x5e6   :  { %v1326_v41 = vmul.f32 %v1488_v29, %v1318_v37 }
 0x5e7   :  { %v1310_v30 = vsub.f32 1.5, %v1309_v1 }
 0x5e8   :  { %v1334_v42 = vadd.f32 %v1489_v11, %v1326_v41 }
 0x5e9   :  { %v1311_v43 = vmul.f32 %v1563_v33, %v1310_v30 }
 0x5ea   :  { %1338 = vst [vmem:[#allocation11 + $0x10] sm:$0xff] %v1334_v42 }
 0x5eb   :  { %v1315_v47 = vsel %vm1314_vm2, %v1563_v33, %v1311_v43 }
 0x5ec   :  { %v1319_v38 = vmul.f32 %v1315_v47, %v2113_v36 }
 0x5ee   :  { %v1327_v21 = vmul.f32 %v1488_v29, %v1319_v38 }
 0x5f0   :  { %v1335_v22 = vadd.f32 %v1489_v11, %v1327_v21 }
 0x5f2   :  { %1339 = vst [vmem:[#allocation11 + $0x18] sm:$0xff] %v1335_v22 }
 0x5f3   :  { %1352 = dma.vmem_to_hbm [thread:$0]  %s1345_s7, 512, %s1347_s1, [#allocation4], %s1721_s13, %s1721_s13, %s1722_s14  }
 0x5f4   :  { %1718 = dma.done.wait [#allocation4], 512  }
 0x5f5   :  { %1719 = vsyncadd [#allocation4], 4294966784 }
 0x5f6   :  { %1357 = vsyncpa [#allocation3], 1 }
 0x5f7   :  { %1358 = vsyncpa [#allocation6], 1 }
 0x5f8   :  { %1359 = vsyncpa [#allocation9], 1 }
 0x5f9   :  { %1360 = vsyncpa [#allocation4], 1 }

</bundles_post_ra>
